<compile_context>
chip_gen: v7x
topology: tpu7x:2x2x1
jax: 0.10.0
libtpu: 0.0.40
codegen_flags: <defaults>
</compile_context>

<pallas_src>
import functools

import numpy as np
import jax
import jax.numpy as jnp
from jax.experimental import pallas as pl
from jax.experimental.pallas import tpu as pltpu


def _res_unit_kernel(x_ref, w1_ref, b1_ref, w2_ref, b2_ref, mask_ref, o_ref, *,
                     W, negative_slope, use_add):
    """Single-invocation kernel: whole (N, C, H*W) slabs resident in VMEM.

    x_ref   : (N, Cin, P)    input, P = H*W on lanes (lane-dense)
    w1_ref  : (Ch, Cin)      folded 1x1 conv weight
    b1_ref  : (Ch, 1)        folded 1x1 conv bias
    w2_ref  : (Cout, 9*Ch)   folded 3x3 conv weight, tap-major col = (ky*3+kx)*Ch+ch
    b2_ref  : (Cout, 1)      folded 3x3 conv bias
    mask_ref: (9, P)         precomputed zero-padding validity masks (f32 0/1)
    o_ref   : (N, Cout, P)   output (lane-dense last dim -> unmasked stores)
    """
    N, Cin, P = x_ref.shape
    Ch = w1_ref.shape[0]
    ns = negative_slope

    # Loop-invariant loads, hoisted once.
    w1 = w1_ref[...]
    b1 = b1_ref[...]
    w2 = w2_ref[...]
    b2 = b2_ref[...]
    masks = mask_ref[...]

    taps = [(dy, dx) for dy in (-1, 0, 1) for dx in (-1, 0, 1)]

    # Static loop over the (tiny) batch: one kernel invocation, no per-step
    # grid / DMA overhead.
    for n in range(N):
        x = x_ref[n]                                        # (Cin, P)

        # ---- layer1: 1x1 conv + folded BN + LeakyReLU (VPU broadcast-FMAs,
        # fine at Cin=4).  TODO(synk): at real Darknet53 channel counts
        # (Cin >= 32) switch this to an MXU jnp.dot with bf16 operands and
        # f32 accumulation. -------------------------------------------------
        h = w1[:, 0:1] * x[0:1, :]
        for ci in range(1, Cin):
            h = h + w1[:, ci:ci + 1] * x[ci:ci + 1, :]
        h = h + b1                                          # (Ch, 1) broadcast
        h = jnp.where(h > 0, h, ns * h)                     # LeakyReLU

        # ---- layer2: 3x3 conv (stride 1, pad 1) as 9 XLU lane-rolls +
        # precomputed masks + 9*Ch VPU broadcast-FMAs.  No im2col concat,
        # no tiny-K MXU matmul. ---------------------------------------------
        acc = None
        for t, (dy, dx) in enumerate(taps):
            d = dy * W + dx
            if d == 0:
                sh = h
            else:
                # sh[:, p] == h[:, (p + d) % P]; wrap-around is masked off.
                sh = pltpu.roll(h, (-d) % P, axis=1)
                sh = sh * masks[t:t + 1, :]
            for ch in range(Ch):
                col = t * Ch + ch
                term = w2[:, col:col + 1] * sh[ch:ch + 1, :]   # (Cout, P)
                acc = term if acc is None else acc + term
        y = acc + b2                                        # (Cout, 1) broadcast
        y = jnp.where(y > 0, y, ns * y)                     # LeakyReLU

        if use_add:                                         # residual shortcut
            y = y + x
        o_ref[n] = y


def res_unit_pallas(x_nchw, w1, b1, w2, b2, *, negative_slope=0.1, use_add=True):
    """x_nchw: (N, Cin, H, W) f32.  Returns (N, Cout, H, W) f32 (NCHW)."""
    N, Cin, H, W = x_nchw.shape
    P = H * W
    Ch = w1.shape[0]
    Cout = w2.shape[0]
    assert w1.shape == (Ch, Cin) and w2.shape == (Cout, 9 * Ch)
    if use_add:
        assert Cin == Cout

    # NCHW -> (N, C, H*W): free row-major reshape (no transpose, no HBM pass).
    x_flat = x_nchw.reshape(N, Cin, P).astype(jnp.float32)

    # Precompute the nine zero-padding validity masks at trace time (hoists
    # iota / div / mod / compares out of the kernel).
    py, px = np.divmod(np.arange(P, dtype=np.int32), W)
    masks = np.stack(
        [((py + dy >= 0) & (py + dy < H) & (px + dx >= 0) & (px + dx < W))
         for dy in (-1, 0, 1) for dx in (-1, 0, 1)],
        axis=0).astype(np.float32)                          # (9, P)
    masks = jnp.asarray(masks)

    kernel = functools.partial(_res_unit_kernel, W=W,
                               negative_slope=negative_slope, use_add=use_add)

    # Single grid step: the whole problem (~14 KiB) lives in VMEM; the old
    # grid=(N,) was a serial loop on v5e/v6e and pure step-overhead on v7x.
    out_flat = pl.pallas_call(
        kernel,
        out_shape=jax.ShapeDtypeStruct((N, Cout, P), jnp.float32),
        in_specs=[pl.BlockSpec(memory_space=pltpu.MemorySpace.VMEM)] * 6,
        out_specs=pl.BlockSpec(memory_space=pltpu.MemorySpace.VMEM),
        # TODO(synk): at real Darknet53 sizes (C up to 1024, large H*W) add an
        # H-strip grid axis with a +-1 row halo (marked "parallel" for v7x's
        # two TCs), move both convs onto the MXU with bf16 operands / f32
        # accumulation (128-aligned tiles on v5e, 256-aligned on v6e/v7x),
        # and set vmem_limit_bytes explicitly for v7x's 64 MiB VMEM.
    )(x_flat, w1, b1, w2, b2, masks)

    # (N, Cout, H*W) -> NCHW: again a free reshape.
    return out_flat.reshape(N, Cout, H, W)


def _fold_bn(conv_w_oihw, gamma, beta, mean, var, eps=1e-5):
    """Fold BatchNorm (inference, running stats) into conv weight/bias."""
    scale = gamma / jnp.sqrt(var + eps)                     # (O,)
    w = conv_w_oihw * scale[:, None, None, None]
    b = beta - mean * scale
    return w, b


def _reference(x_nchw, w1_oihw, b1, w2_oihw, b2, negative_slope, use_add):
    """Pure-JAX NCHW reference for numerical validation."""
    def conv(x, w, b, pad):
        y = jax.lax.conv_general_dilated(
            x, w, window_strides=(1, 1),
            padding=[(pad, pad), (pad, pad)],
            dimension_numbers=("NCHW", "OIHW", "NCHW"),
            precision=jax.lax.Precision.HIGHEST)
        return y + b[None, :, None, None]

    def leaky(v):
        return jnp.where(v > 0, v, negative_slope * v)

    h = leaky(conv(x_nchw, w1_oihw, b1, 0))
    y = leaky(conv(h, w2_oihw, b2, 1))
    return y + x_nchw if use_add else y


if __name__ == "__main__":
    # Darknet53 Res_unit(in_channels=4):
    #   layer1 = ConvBnLeaky(4 -> 2, ksize=1), layer2 = ConvBnLeaky(2 -> 4, ksize=3)
    #   y = x + layer2(layer1(x)),  LeakyReLU slope 0.1 (darknet convention)
    in_channels = 4
    hidden = in_channels // 2            # 2
    out_channels = in_channels           # 4
    negative_slope = 0.1
    use_add = True

    N, H, W = 2, 16, 16
    key = jax.random.PRNGKey(0)
    keys = jax.random.split(key, 12)

    x = jax.random.normal(keys[0], (N, in_channels, H, W), jnp.float32)

    conv1_w = 0.3 * jax.random.normal(keys[1], (hidden, in_channels, 1, 1), jnp.float32)
    bn1_gamma = 1.0 + 0.1 * jax.random.normal(keys[2], (hidden,), jnp.float32)
    bn1_beta = 0.1 * jax.random.normal(keys[3], (hidden,), jnp.float32)
    bn1_mean = 0.1 * jax.random.normal(keys[4], (hidden,), jnp.float32)
    bn1_var = jnp.abs(jax.random.normal(keys[5], (hidden,), jnp.float32)) + 0.5

    conv2_w = 0.3 * jax.random.normal(keys[6], (out_channels, hidden, 3, 3), jnp.float32)
    bn2_gamma = 1.0 + 0.1 * jax.random.normal(keys[7], (out_channels,), jnp.float32)
    bn2_beta = 0.1 * jax.random.normal(keys[8], (out_channels,), jnp.float32)
    bn2_mean = 0.1 * jax.random.normal(keys[9], (out_channels,), jnp.float32)
    bn2_var = jnp.abs(jax.random.normal(keys[10], (out_channels,), jnp.float32)) + 0.5

    # Fold BN into conv weights/biases (inference semantics).
    w1_f, b1_f = _fold_bn(conv1_w, bn1_gamma, bn1_beta, bn1_mean, bn1_var)
    w2_f, b2_f = _fold_bn(conv2_w, bn2_gamma, bn2_beta, bn2_mean, bn2_var)

    # Repack for the (C, H*W) kernel layout:
    #   1x1 conv (O,I,1,1) -> (O, I)     weight for VPU FMAs
    #   3x3 conv (O,I,3,3) -> (O, 9*I)   tap-major: col = (ky*3+kx)*I + i
    w1_k = w1_f[:, :, 0, 0]                                        # (Ch, Cin)
    b1_k = b1_f.reshape(hidden, 1)                                 # (Ch, 1)
    w2_k = jnp.transpose(w2_f, (0, 2, 3, 1)).reshape(out_channels, 9 * hidden)
    b2_k = b2_f.reshape(out_channels, 1)                           # (Cout, 1)

    y = res_unit_pallas(x, w1_k, b1_k, w2_k, b2_k,
                        negative_slope=negative_slope, use_add=use_add)
    y = jax.block_until_ready(y)

    y_ref = _reference(x, w1_f, b1_f, w2_f, b2_f, negative_slope, use_add)
    assert y.shape == (N, out_channels, H, W)
    assert jnp.allclose(y, y_ref, atol=5e-5, rtol=5e-5), (
        f"max abs err = {jnp.max(jnp.abs(y - y_ref))}")

    print("KERNEL_OK")
</pallas_src>

<mosaic_0001>
module attributes {stable_mosaic.version = 11 : i64} {
  func.func @_res_unit_kernel(%arg0: memref<2x4x256xf32, #tpu.memory_space<vmem>>, %arg1: memref<2x4xf32, #tpu.memory_space<vmem>>, %arg2: memref<2x1xf32, #tpu.memory_space<vmem>>, %arg3: memref<4x18xf32, #tpu.memory_space<vmem>>, %arg4: memref<4x1xf32, #tpu.memory_space<vmem>>, %arg5: memref<9x256xf32, #tpu.memory_space<vmem>>, %arg6: memref<2x4x256xf32, #tpu.memory_space<vmem>>) attributes {dimension_semantics = [], scalar_prefetch = 0 : i64, scratch_operands = 0 : i64, tpu.core_type = #tpu.core_type<tc>} {
    %c0 = arith.constant 0 : index
    %c0_0 = arith.constant 0 : index
    %0 = vector.load %arg1[%c0, %c0_0] : memref<2x4xf32, #tpu.memory_space<vmem>>, vector<2x4xf32>
    %c0_1 = arith.constant 0 : index
    %c0_2 = arith.constant 0 : index
    %1 = vector.load %arg2[%c0_1, %c0_2] : memref<2x1xf32, #tpu.memory_space<vmem>>, vector<2x1xf32>
    %c0_3 = arith.constant 0 : index
    %c0_4 = arith.constant 0 : index
    %2 = vector.load %arg3[%c0_3, %c0_4] : memref<4x18xf32, #tpu.memory_space<vmem>>, vector<4x18xf32>
    %c0_5 = arith.constant 0 : index
    %c0_6 = arith.constant 0 : index
    %3 = vector.load %arg4[%c0_5, %c0_6] : memref<4x1xf32, #tpu.memory_space<vmem>>, vector<4x1xf32>
    %c0_7 = arith.constant 0 : index
    %c0_8 = arith.constant 0 : index
    %4 = vector.load %arg5[%c0_7, %c0_8] : memref<9x256xf32, #tpu.memory_space<vmem>>, vector<9x256xf32>
    %c0_9 = arith.constant 0 : index
    %c0_10 = arith.constant 0 : index
    %c0_11 = arith.constant 0 : index
    %5 = vector.load %arg0[%c0_9, %c0_10, %c0_11] : memref<2x4x256xf32, #tpu.memory_space<vmem>>, vector<1x4x256xf32>
    %6 = vector.shape_cast %5 : vector<1x4x256xf32> to vector<4x256xf32>
    %7 = vector.extract_strided_slice %0 {offsets = [0, 0], sizes = [2, 1], strides = [1, 1]} : vector<2x4xf32> to vector<2x1xf32>
    %8 = vector.extract_strided_slice %6 {offsets = [0, 0], sizes = [1, 256], strides = [1, 1]} : vector<4x256xf32> to vector<1x256xf32>
    %9 = vector.broadcast %7 : vector<2x1xf32> to vector<2x256xf32>
    %10 = vector.broadcast %8 : vector<1x256xf32> to vector<2x256xf32>
    %11 = arith.mulf %9, %10 : vector<2x256xf32>
    %12 = vector.extract_strided_slice %0 {offsets = [0, 1], sizes = [2, 1], strides = [1, 1]} : vector<2x4xf32> to vector<2x1xf32>
    %13 = vector.extract_strided_slice %6 {offsets = [1, 0], sizes = [1, 256], strides = [1, 1]} : vector<4x256xf32> to vector<1x256xf32>
    %14 = vector.broadcast %12 : vector<2x1xf32> to vector<2x256xf32>
    %15 = vector.broadcast %13 : vector<1x256xf32> to vector<2x256xf32>
    %16 = arith.mulf %14, %15 : vector<2x256xf32>
    %17 = arith.addf %11, %16 : vector<2x256xf32>
    %18 = vector.extract_strided_slice %0 {offsets = [0, 2], sizes = [2, 1], strides = [1, 1]} : vector<2x4xf32> to vector<2x1xf32>
    %19 = vector.extract_strided_slice %6 {offsets = [2, 0], sizes = [1, 256], strides = [1, 1]} : vector<4x256xf32> to vector<1x256xf32>
    %20 = vector.broadcast %18 : vector<2x1xf32> to vector<2x256xf32>
    %21 = vector.broadcast %19 : vector<1x256xf32> to vector<2x256xf32>
    %22 = arith.mulf %20, %21 : vector<2x256xf32>
    %23 = arith.addf %17, %22 : vector<2x256xf32>
    %24 = vector.extract_strided_slice %0 {offsets = [0, 3], sizes = [2, 1], strides = [1, 1]} : vector<2x4xf32> to vector<2x1xf32>
    %25 = vector.extract_strided_slice %6 {offsets = [3, 0], sizes = [1, 256], strides = [1, 1]} : vector<4x256xf32> to vector<1x256xf32>
    %26 = vector.broadcast %24 : vector<2x1xf32> to vector<2x256xf32>
    %27 = vector.broadcast %25 : vector<1x256xf32> to vector<2x256xf32>
    %28 = arith.mulf %26, %27 : vector<2x256xf32>
    %29 = arith.addf %23, %28 : vector<2x256xf32>
    %30 = vector.broadcast %1 : vector<2x1xf32> to vector<2x256xf32>
    %31 = arith.addf %29, %30 : vector<2x256xf32>
    %cst = arith.constant 0.000000e+00 : f32
    %32 = vector.broadcast %cst : f32 to vector<2x256xf32>
    %33 = arith.cmpf ogt, %31, %32 : vector<2x256xf32>
    %cst_12 = arith.constant 1.000000e-01 : f32
    %34 = vector.broadcast %cst_12 : f32 to vector<2x256xf32>
    %35 = arith.mulf %34, %31 : vector<2x256xf32>
    %36 = arith.select %33, %31, %35 : vector<2x256xi1>, vector<2x256xf32>
    %c17_i32 = arith.constant 17 : i32
    %37 = tpu.dynamic_rotate %36 by %c17_i32 dim 1 : vector<2x256xf32>, i32 -> vector<2x256xf32>
    %38 = vector.extract_strided_slice %4 {offsets = [0, 0], sizes = [1, 256], strides = [1, 1]} : vector<9x256xf32> to vector<1x256xf32>
    %39 = vector.broadcast %38 : vector<1x256xf32> to vector<2x256xf32>
    %40 = arith.mulf %37, %39 : vector<2x256xf32>
    %41 = vector.extract_strided_slice %2 {offsets = [0, 0], sizes = [4, 1], strides = [1, 1]} : vector<4x18xf32> to vector<4x1xf32>
    %42 = vector.extract_strided_slice %40 {offsets = [0, 0], sizes = [1, 256], strides = [1, 1]} : vector<2x256xf32> to vector<1x256xf32>
    %43 = vector.broadcast %41 : vector<4x1xf32> to vector<4x256xf32>
    %44 = vector.broadcast %42 : vector<1x256xf32> to vector<4x256xf32>
    %45 = arith.mulf %43, %44 : vector<4x256xf32>
    %46 = vector.extract_strided_slice %2 {offsets = [0, 1], sizes = [4, 1], strides = [1, 1]} : vector<4x18xf32> to vector<4x1xf32>
    %47 = vector.extract_strided_slice %40 {offsets = [1, 0], sizes = [1, 256], strides = [1, 1]} : vector<2x256xf32> to vector<1x256xf32>
    %48 = vector.broadcast %46 : vector<4x1xf32> to vector<4x256xf32>
    %49 = vector.broadcast %47 : vector<1x256xf32> to vector<4x256xf32>
    %50 = arith.mulf %48, %49 : vector<4x256xf32>
    %51 = arith.addf %45, %50 : vector<4x256xf32>
    %c16_i32 = arith.constant 16 : i32
    %52 = tpu.dynamic_rotate %36 by %c16_i32 dim 1 : vector<2x256xf32>, i32 -> vector<2x256xf32>
    %53 = vector.extract_strided_slice %4 {offsets = [1, 0], sizes = [1, 256], strides = [1, 1]} : vector<9x256xf32> to vector<1x256xf32>
    %54 = vector.broadcast %53 : vector<1x256xf32> to vector<2x256xf32>
    %55 = arith.mulf %52, %54 : vector<2x256xf32>
    %56 = vector.extract_strided_slice %2 {offsets = [0, 2], sizes = [4, 1], strides = [1, 1]} : vector<4x18xf32> to vector<4x1xf32>
    %57 = vector.extract_strided_slice %55 {offsets = [0, 0], sizes = [1, 256], strides = [1, 1]} : vector<2x256xf32> to vector<1x256xf32>
    %58 = vector.broadcast %56 : vector<4x1xf32> to vector<4x256xf32>
    %59 = vector.broadcast %57 : vector<1x256xf32> to vector<4x256xf32>
    %60 = arith.mulf %58, %59 : vector<4x256xf32>
    %61 = arith.addf %51, %60 : vector<4x256xf32>
    %62 = vector.extract_strided_slice %2 {offsets = [0, 3], sizes = [4, 1], strides = [1, 1]} : vector<4x18xf32> to vector<4x1xf32>
    %63 = vector.extract_strided_slice %55 {offsets = [1, 0], sizes = [1, 256], strides = [1, 1]} : vector<2x256xf32> to vector<1x256xf32>
    %64 = vector.broadcast %62 : vector<4x1xf32> to vector<4x256xf32>
    %65 = vector.broadcast %63 : vector<1x256xf32> to vector<4x256xf32>
    %66 = arith.mulf %64, %65 : vector<4x256xf32>
    %67 = arith.addf %61, %66 : vector<4x256xf32>
    %c15_i32 = arith.constant 15 : i32
    %68 = tpu.dynamic_rotate %36 by %c15_i32 dim 1 : vector<2x256xf32>, i32 -> vector<2x256xf32>
    %69 = vector.extract_strided_slice %4 {offsets = [2, 0], sizes = [1, 256], strides = [1, 1]} : vector<9x256xf32> to vector<1x256xf32>
    %70 = vector.broadcast %69 : vector<1x256xf32> to vector<2x256xf32>
    %71 = arith.mulf %68, %70 : vector<2x256xf32>
    %72 = vector.extract_strided_slice %2 {offsets = [0, 4], sizes = [4, 1], strides = [1, 1]} : vector<4x18xf32> to vector<4x1xf32>
    %73 = vector.extract_strided_slice %71 {offsets = [0, 0], sizes = [1, 256], strides = [1, 1]} : vector<2x256xf32> to vector<1x256xf32>
    %74 = vector.broadcast %72 : vector<4x1xf32> to vector<4x256xf32>
    %75 = vector.broadcast %73 : vector<1x256xf32> to vector<4x256xf32>
    %76 = arith.mulf %74, %75 : vector<4x256xf32>
    %77 = arith.addf %67, %76 : vector<4x256xf32>
    %78 = vector.extract_strided_slice %2 {offsets = [0, 5], sizes = [4, 1], strides = [1, 1]} : vector<4x18xf32> to vector<4x1xf32>
    %79 = vector.extract_strided_slice %71 {offsets = [1, 0], sizes = [1, 256], strides = [1, 1]} : vector<2x256xf32> to vector<1x256xf32>
    %80 = vector.broadcast %78 : vector<4x1xf32> to vector<4x256xf32>
    %81 = vector.broadcast %79 : vector<1x256xf32> to vector<4x256xf32>
    %82 = arith.mulf %80, %81 : vector<4x256xf32>
    %83 = arith.addf %77, %82 : vector<4x256xf32>
    %c1_i32 = arith.constant 1 : i32
    %84 = tpu.dynamic_rotate %36 by %c1_i32 dim 1 : vector<2x256xf32>, i32 -> vector<2x256xf32>
    %85 = vector.extract_strided_slice %4 {offsets = [3, 0], sizes = [1, 256], strides = [1, 1]} : vector<9x256xf32> to vector<1x256xf32>
    %86 = vector.broadcast %85 : vector<1x256xf32> to vector<2x256xf32>
    %87 = arith.mulf %84, %86 : vector<2x256xf32>
    %88 = vector.extract_strided_slice %2 {offsets = [0, 6], sizes = [4, 1], strides = [1, 1]} : vector<4x18xf32> to vector<4x1xf32>
    %89 = vector.extract_strided_slice %87 {offsets = [0, 0], sizes = [1, 256], strides = [1, 1]} : vector<2x256xf32> to vector<1x256xf32>
    %90 = vector.broadcast %88 : vector<4x1xf32> to vector<4x256xf32>
    %91 = vector.broadcast %89 : vector<1x256xf32> to vector<4x256xf32>
    %92 = arith.mulf %90, %91 : vector<4x256xf32>
    %93 = arith.addf %83, %92 : vector<4x256xf32>
    %94 = vector.extract_strided_slice %2 {offsets = [0, 7], sizes = [4, 1], strides = [1, 1]} : vector<4x18xf32> to vector<4x1xf32>
    %95 = vector.extract_strided_slice %87 {offsets = [1, 0], sizes = [1, 256], strides = [1, 1]} : vector<2x256xf32> to vector<1x256xf32>
    %96 = vector.broadcast %94 : vector<4x1xf32> to vector<4x256xf32>
    %97 = vector.broadcast %95 : vector<1x256xf32> to vector<4x256xf32>
    %98 = arith.mulf %96, %97 : vector<4x256xf32>
    %99 = arith.addf %93, %98 : vector<4x256xf32>
    %100 = vector.extract_strided_slice %2 {offsets = [0, 8], sizes = [4, 1], strides = [1, 1]} : vector<4x18xf32> to vector<4x1xf32>
    %101 = vector.extract_strided_slice %36 {offsets = [0, 0], sizes = [1, 256], strides = [1, 1]} : vector<2x256xf32> to vector<1x256xf32>
    %102 = vector.broadcast %100 : vector<4x1xf32> to vector<4x256xf32>
    %103 = vector.broadcast %101 : vector<1x256xf32> to vector<4x256xf32>
    %104 = arith.mulf %102, %103 : vector<4x256xf32>
    %105 = arith.addf %99, %104 : vector<4x256xf32>
    %106 = vector.extract_strided_slice %2 {offsets = [0, 9], sizes = [4, 1], strides = [1, 1]} : vector<4x18xf32> to vector<4x1xf32>
    %107 = vector.extract_strided_slice %36 {offsets = [1, 0], sizes = [1, 256], strides = [1, 1]} : vector<2x256xf32> to vector<1x256xf32>
    %108 = vector.broadcast %106 : vector<4x1xf32> to vector<4x256xf32>
    %109 = vector.broadcast %107 : vector<1x256xf32> to vector<4x256xf32>
    %110 = arith.mulf %108, %109 : vector<4x256xf32>
    %111 = arith.addf %105, %110 : vector<4x256xf32>
    %c255_i32 = arith.constant 255 : i32
    %112 = tpu.dynamic_rotate %36 by %c255_i32 dim 1 : vector<2x256xf32>, i32 -> vector<2x256xf32>
    %113 = vector.extract_strided_slice %4 {offsets = [5, 0], sizes = [1, 256], strides = [1, 1]} : vector<9x256xf32> to vector<1x256xf32>
    %114 = vector.broadcast %113 : vector<1x256xf32> to vector<2x256xf32>
    %115 = arith.mulf %112, %114 : vector<2x256xf32>
    %116 = vector.extract_strided_slice %2 {offsets = [0, 10], sizes = [4, 1], strides = [1, 1]} : vector<4x18xf32> to vector<4x1xf32>
    %117 = vector.extract_strided_slice %115 {offsets = [0, 0], sizes = [1, 256], strides = [1, 1]} : vector<2x256xf32> to vector<1x256xf32>
    %118 = vector.broadcast %116 : vector<4x1xf32> to vector<4x256xf32>
    %119 = vector.broadcast %117 : vector<1x256xf32> to vector<4x256xf32>
    %120 = arith.mulf %118, %119 : vector<4x256xf32>
    %121 = arith.addf %111, %120 : vector<4x256xf32>
    %122 = vector.extract_strided_slice %2 {offsets = [0, 11], sizes = [4, 1], strides = [1, 1]} : vector<4x18xf32> to vector<4x1xf32>
    %123 = vector.extract_strided_slice %115 {offsets = [1, 0], sizes = [1, 256], strides = [1, 1]} : vector<2x256xf32> to vector<1x256xf32>
    %124 = vector.broadcast %122 : vector<4x1xf32> to vector<4x256xf32>
    %125 = vector.broadcast %123 : vector<1x256xf32> to vector<4x256xf32>
    %126 = arith.mulf %124, %125 : vector<4x256xf32>
    %127 = arith.addf %121, %126 : vector<4x256xf32>
    %c241_i32 = arith.constant 241 : i32
    %128 = tpu.dynamic_rotate %36 by %c241_i32 dim 1 : vector<2x256xf32>, i32 -> vector<2x256xf32>
    %129 = vector.extract_strided_slice %4 {offsets = [6, 0], sizes = [1, 256], strides = [1, 1]} : vector<9x256xf32> to vector<1x256xf32>
    %130 = vector.broadcast %129 : vector<1x256xf32> to vector<2x256xf32>
    %131 = arith.mulf %128, %130 : vector<2x256xf32>
    %132 = vector.extract_strided_slice %2 {offsets = [0, 12], sizes = [4, 1], strides = [1, 1]} : vector<4x18xf32> to vector<4x1xf32>
    %133 = vector.extract_strided_slice %131 {offsets = [0, 0], sizes = [1, 256], strides = [1, 1]} : vector<2x256xf32> to vector<1x256xf32>
    %134 = vector.broadcast %132 : vector<4x1xf32> to vector<4x256xf32>
    %135 = vector.broadcast %133 : vector<1x256xf32> to vector<4x256xf32>
    %136 = arith.mulf %134, %135 : vector<4x256xf32>
    %137 = arith.addf %127, %136 : vector<4x256xf32>
    %138 = vector.extract_strided_slice %2 {offsets = [0, 13], sizes = [4, 1], strides = [1, 1]} : vector<4x18xf32> to vector<4x1xf32>
    %139 = vector.extract_strided_slice %131 {offsets = [1, 0], sizes = [1, 256], strides = [1, 1]} : vector<2x256xf32> to vector<1x256xf32>
    %140 = vector.broadcast %138 : vector<4x1xf32> to vector<4x256xf32>
    %141 = vector.broadcast %139 : vector<1x256xf32> to vector<4x256xf32>
    %142 = arith.mulf %140, %141 : vector<4x256xf32>
    %143 = arith.addf %137, %142 : vector<4x256xf32>
    %c240_i32 = arith.constant 240 : i32
    %144 = tpu.dynamic_rotate %36 by %c240_i32 dim 1 : vector<2x256xf32>, i32 -> vector<2x256xf32>
    %145 = vector.extract_strided_slice %4 {offsets = [7, 0], sizes = [1, 256], strides = [1, 1]} : vector<9x256xf32> to vector<1x256xf32>
    %146 = vector.broadcast %145 : vector<1x256xf32> to vector<2x256xf32>
    %147 = arith.mulf %144, %146 : vector<2x256xf32>
    %148 = vector.extract_strided_slice %2 {offsets = [0, 14], sizes = [4, 1], strides = [1, 1]} : vector<4x18xf32> to vector<4x1xf32>
    %149 = vector.extract_strided_slice %147 {offsets = [0, 0], sizes = [1, 256], strides = [1, 1]} : vector<2x256xf32> to vector<1x256xf32>
    %150 = vector.broadcast %148 : vector<4x1xf32> to vector<4x256xf32>
    %151 = vector.broadcast %149 : vector<1x256xf32> to vector<4x256xf32>
    %152 = arith.mulf %150, %151 : vector<4x256xf32>
    %153 = arith.addf %143, %152 : vector<4x256xf32>
    %154 = vector.extract_strided_slice %2 {offsets = [0, 15], sizes = [4, 1], strides = [1, 1]} : vector<4x18xf32> to vector<4x1xf32>
    %155 = vector.extract_strided_slice %147 {offsets = [1, 0], sizes = [1, 256], strides = [1, 1]} : vector<2x256xf32> to vector<1x256xf32>
    %156 = vector.broadcast %154 : vector<4x1xf32> to vector<4x256xf32>
    %157 = vector.broadcast %155 : vector<1x256xf32> to vector<4x256xf32>
    %158 = arith.mulf %156, %157 : vector<4x256xf32>
    %159 = arith.addf %153, %158 : vector<4x256xf32>
    %c239_i32 = arith.constant 239 : i32
    %160 = tpu.dynamic_rotate %36 by %c239_i32 dim 1 : vector<2x256xf32>, i32 -> vector<2x256xf32>
    %161 = vector.extract_strided_slice %4 {offsets = [8, 0], sizes = [1, 256], strides = [1, 1]} : vector<9x256xf32> to vector<1x256xf32>
    %162 = vector.broadcast %161 : vector<1x256xf32> to vector<2x256xf32>
    %163 = arith.mulf %160, %162 : vector<2x256xf32>
    %164 = vector.extract_strided_slice %2 {offsets = [0, 16], sizes = [4, 1], strides = [1, 1]} : vector<4x18xf32> to vector<4x1xf32>
    %165 = vector.extract_strided_slice %163 {offsets = [0, 0], sizes = [1, 256], strides = [1, 1]} : vector<2x256xf32> to vector<1x256xf32>
    %166 = vector.broadcast %164 : vector<4x1xf32> to vector<4x256xf32>
    %167 = vector.broadcast %165 : vector<1x256xf32> to vector<4x256xf32>
    %168 = arith.mulf %166, %167 : vector<4x256xf32>
    %169 = arith.addf %159, %168 : vector<4x256xf32>
    %170 = vector.extract_strided_slice %2 {offsets = [0, 17], sizes = [4, 1], strides = [1, 1]} : vector<4x18xf32> to vector<4x1xf32>
    %171 = vector.extract_strided_slice %163 {offsets = [1, 0], sizes = [1, 256], strides = [1, 1]} : vector<2x256xf32> to vector<1x256xf32>
    %172 = vector.broadcast %170 : vector<4x1xf32> to vector<4x256xf32>
    %173 = vector.broadcast %171 : vector<1x256xf32> to vector<4x256xf32>
    %174 = arith.mulf %172, %173 : vector<4x256xf32>
    %175 = arith.addf %169, %174 : vector<4x256xf32>
    %176 = vector.broadcast %3 : vector<4x1xf32> to vector<4x256xf32>
    %177 = arith.addf %175, %176 : vector<4x256xf32>
    %cst_13 = arith.constant 0.000000e+00 : f32
    %178 = vector.broadcast %cst_13 : f32 to vector<4x256xf32>
    %179 = arith.cmpf ogt, %177, %178 : vector<4x256xf32>
    %cst_14 = arith.constant 1.000000e-01 : f32
    %180 = vector.broadcast %cst_14 : f32 to vector<4x256xf32>
    %181 = arith.mulf %180, %177 : vector<4x256xf32>
    %182 = arith.select %179, %177, %181 : vector<4x256xi1>, vector<4x256xf32>
    %183 = arith.addf %182, %6 : vector<4x256xf32>
    %c0_15 = arith.constant 0 : index
    %c0_16 = arith.constant 0 : index
    %c0_17 = arith.constant 0 : index
    %184 = vector.load %arg6[%c0_15, %c0_16, %c0_17] : memref<2x4x256xf32, #tpu.memory_space<vmem>>, vector<1x4x256xf32>
    %185 = vector.shape_cast %184 : vector<1x4x256xf32> to vector<4x256xf32>
    %186 = vector.shape_cast %183 : vector<4x256xf32> to vector<1x4x256xf32>
    tpu.vector_store %arg6[%c0_15, %c0_16, %c0_17], %186 {strides = array<i32>} : memref<2x4x256xf32, #tpu.memory_space<vmem>>, vector<1x4x256xf32>,
    %c1 = arith.constant 1 : index
    %c0_18 = arith.constant 0 : index
    %c0_19 = arith.constant 0 : index
    %187 = vector.load %arg0[%c1, %c0_18, %c0_19] : memref<2x4x256xf32, #tpu.memory_space<vmem>>, vector<1x4x256xf32>
    %188 = vector.shape_cast %187 : vector<1x4x256xf32> to vector<4x256xf32>
    %189 = vector.extract_strided_slice %0 {offsets = [0, 0], sizes = [2, 1], strides = [1, 1]} : vector<2x4xf32> to vector<2x1xf32>
    %190 = vector.extract_strided_slice %188 {offsets = [0, 0], sizes = [1, 256], strides = [1, 1]} : vector<4x256xf32> to vector<1x256xf32>
    %191 = vector.broadcast %189 : vector<2x1xf32> to vector<2x256xf32>
    %192 = vector.broadcast %190 : vector<1x256xf32> to vector<2x256xf32>
    %193 = arith.mulf %191, %192 : vector<2x256xf32>
    %194 = vector.extract_strided_slice %0 {offsets = [0, 1], sizes = [2, 1], strides = [1, 1]} : vector<2x4xf32> to vector<2x1xf32>
    %195 = vector.extract_strided_slice %188 {offsets = [1, 0], sizes = [1, 256], strides = [1, 1]} : vector<4x256xf32> to vector<1x256xf32>
    %196 = vector.broadcast %194 : vector<2x1xf32> to vector<2x256xf32>
    %197 = vector.broadcast %195 : vector<1x256xf32> to vector<2x256xf32>
    %198 = arith.mulf %196, %197 : vector<2x256xf32>
    %199 = arith.addf %193, %198 : vector<2x256xf32>
    %200 = vector.extract_strided_slice %0 {offsets = [0, 2], sizes = [2, 1], strides = [1, 1]} : vector<2x4xf32> to vector<2x1xf32>
    %201 = vector.extract_strided_slice %188 {offsets = [2, 0], sizes = [1, 256], strides = [1, 1]} : vector<4x256xf32> to vector<1x256xf32>
    %202 = vector.broadcast %200 : vector<2x1xf32> to vector<2x256xf32>
    %203 = vector.broadcast %201 : vector<1x256xf32> to vector<2x256xf32>
    %204 = arith.mulf %202, %203 : vector<2x256xf32>
    %205 = arith.addf %199, %204 : vector<2x256xf32>
    %206 = vector.extract_strided_slice %0 {offsets = [0, 3], sizes = [2, 1], strides = [1, 1]} : vector<2x4xf32> to vector<2x1xf32>
    %207 = vector.extract_strided_slice %188 {offsets = [3, 0], sizes = [1, 256], strides = [1, 1]} : vector<4x256xf32> to vector<1x256xf32>
    %208 = vector.broadcast %206 : vector<2x1xf32> to vector<2x256xf32>
    %209 = vector.broadcast %207 : vector<1x256xf32> to vector<2x256xf32>
    %210 = arith.mulf %208, %209 : vector<2x256xf32>
    %211 = arith.addf %205, %210 : vector<2x256xf32>
    %212 = vector.broadcast %1 : vector<2x1xf32> to vector<2x256xf32>
    %213 = arith.addf %211, %212 : vector<2x256xf32>
    %cst_20 = arith.constant 0.000000e+00 : f32
    %214 = vector.broadcast %cst_20 : f32 to vector<2x256xf32>
    %215 = arith.cmpf ogt, %213, %214 : vector<2x256xf32>
    %cst_21 = arith.constant 1.000000e-01 : f32
    %216 = vector.broadcast %cst_21 : f32 to vector<2x256xf32>
    %217 = arith.mulf %216, %213 : vector<2x256xf32>
    %218 = arith.select %215, %213, %217 : vector<2x256xi1>, vector<2x256xf32>
    %c17_i32_22 = arith.constant 17 : i32
    %219 = tpu.dynamic_rotate %218 by %c17_i32_22 dim 1 : vector<2x256xf32>, i32 -> vector<2x256xf32>
    %220 = vector.extract_strided_slice %4 {offsets = [0, 0], sizes = [1, 256], strides = [1, 1]} : vector<9x256xf32> to vector<1x256xf32>
    %221 = vector.broadcast %220 : vector<1x256xf32> to vector<2x256xf32>
    %222 = arith.mulf %219, %221 : vector<2x256xf32>
    %223 = vector.extract_strided_slice %2 {offsets = [0, 0], sizes = [4, 1], strides = [1, 1]} : vector<4x18xf32> to vector<4x1xf32>
    %224 = vector.extract_strided_slice %222 {offsets = [0, 0], sizes = [1, 256], strides = [1, 1]} : vector<2x256xf32> to vector<1x256xf32>
    %225 = vector.broadcast %223 : vector<4x1xf32> to vector<4x256xf32>
    %226 = vector.broadcast %224 : vector<1x256xf32> to vector<4x256xf32>
    %227 = arith.mulf %225, %226 : vector<4x256xf32>
    %228 = vector.extract_strided_slice %2 {offsets = [0, 1], sizes = [4, 1], strides = [1, 1]} : vector<4x18xf32> to vector<4x1xf32>
    %229 = vector.extract_strided_slice %222 {offsets = [1, 0], sizes = [1, 256], strides = [1, 1]} : vector<2x256xf32> to vector<1x256xf32>
    %230 = vector.broadcast %228 : vector<4x1xf32> to vector<4x256xf32>
    %231 = vector.broadcast %229 : vector<1x256xf32> to vector<4x256xf32>
    %232 = arith.mulf %230, %231 : vector<4x256xf32>
    %233 = arith.addf %227, %232 : vector<4x256xf32>
    %c16_i32_23 = arith.constant 16 : i32
    %234 = tpu.dynamic_rotate %218 by %c16_i32_23 dim 1 : vector<2x256xf32>, i32 -> vector<2x256xf32>
    %235 = vector.extract_strided_slice %4 {offsets = [1, 0], sizes = [1, 256], strides = [1, 1]} : vector<9x256xf32> to vector<1x256xf32>
    %236 = vector.broadcast %235 : vector<1x256xf32> to vector<2x256xf32>
    %237 = arith.mulf %234, %236 : vector<2x256xf32>
    %238 = vector.extract_strided_slice %2 {offsets = [0, 2], sizes = [4, 1], strides = [1, 1]} : vector<4x18xf32> to vector<4x1xf32>
    %239 = vector.extract_strided_slice %237 {offsets = [0, 0], sizes = [1, 256], strides = [1, 1]} : vector<2x256xf32> to vector<1x256xf32>
    %240 = vector.broadcast %238 : vector<4x1xf32> to vector<4x256xf32>
    %241 = vector.broadcast %239 : vector<1x256xf32> to vector<4x256xf32>
    %242 = arith.mulf %240, %241 : vector<4x256xf32>
    %243 = arith.addf %233, %242 : vector<4x256xf32>
    %244 = vector.extract_strided_slice %2 {offsets = [0, 3], sizes = [4, 1], strides = [1, 1]} : vector<4x18xf32> to vector<4x1xf32>
    %245 = vector.extract_strided_slice %237 {offsets = [1, 0], sizes = [1, 256], strides = [1, 1]} : vector<2x256xf32> to vector<1x256xf32>
    %246 = vector.broadcast %244 : vector<4x1xf32> to vector<4x256xf32>
    %247 = vector.broadcast %245 : vector<1x256xf32> to vector<4x256xf32>
    %248 = arith.mulf %246, %247 : vector<4x256xf32>
    %249 = arith.addf %243, %248 : vector<4x256xf32>
    %c15_i32_24 = arith.constant 15 : i32
    %250 = tpu.dynamic_rotate %218 by %c15_i32_24 dim 1 : vector<2x256xf32>, i32 -> vector<2x256xf32>
    %251 = vector.extract_strided_slice %4 {offsets = [2, 0], sizes = [1, 256], strides = [1, 1]} : vector<9x256xf32> to vector<1x256xf32>
    %252 = vector.broadcast %251 : vector<1x256xf32> to vector<2x256xf32>
    %253 = arith.mulf %250, %252 : vector<2x256xf32>
    %254 = vector.extract_strided_slice %2 {offsets = [0, 4], sizes = [4, 1], strides = [1, 1]} : vector<4x18xf32> to vector<4x1xf32>
    %255 = vector.extract_strided_slice %253 {offsets = [0, 0], sizes = [1, 256], strides = [1, 1]} : vector<2x256xf32> to vector<1x256xf32>
    %256 = vector.broadcast %254 : vector<4x1xf32> to vector<4x256xf32>
    %257 = vector.broadcast %255 : vector<1x256xf32> to vector<4x256xf32>
    %258 = arith.mulf %256, %257 : vector<4x256xf32>
    %259 = arith.addf %249, %258 : vector<4x256xf32>
    %260 = vector.extract_strided_slice %2 {offsets = [0, 5], sizes = [4, 1], strides = [1, 1]} : vector<4x18xf32> to vector<4x1xf32>
    %261 = vector.extract_strided_slice %253 {offsets = [1, 0], sizes = [1, 256], strides = [1, 1]} : vector<2x256xf32> to vector<1x256xf32>
    %262 = vector.broadcast %260 : vector<4x1xf32> to vector<4x256xf32>
    %263 = vector.broadcast %261 : vector<1x256xf32> to vector<4x256xf32>
    %264 = arith.mulf %262, %263 : vector<4x256xf32>
    %265 = arith.addf %259, %264 : vector<4x256xf32>
    %c1_i32_25 = arith.constant 1 : i32
    %266 = tpu.dynamic_rotate %218 by %c1_i32_25 dim 1 : vector<2x256xf32>, i32 -> vector<2x256xf32>
    %267 = vector.extract_strided_slice %4 {offsets = [3, 0], sizes = [1, 256], strides = [1, 1]} : vector<9x256xf32> to vector<1x256xf32>
    %268 = vector.broadcast %267 : vector<1x256xf32> to vector<2x256xf32>
    %269 = arith.mulf %266, %268 : vector<2x256xf32>
    %270 = vector.extract_strided_slice %2 {offsets = [0, 6], sizes = [4, 1], strides = [1, 1]} : vector<4x18xf32> to vector<4x1xf32>
    %271 = vector.extract_strided_slice %269 {offsets = [0, 0], sizes = [1, 256], strides = [1, 1]} : vector<2x256xf32> to vector<1x256xf32>
    %272 = vector.broadcast %270 : vector<4x1xf32> to vector<4x256xf32>
    %273 = vector.broadcast %271 : vector<1x256xf32> to vector<4x256xf32>
    %274 = arith.mulf %272, %273 : vector<4x256xf32>
    %275 = arith.addf %265, %274 : vector<4x256xf32>
    %276 = vector.extract_strided_slice %2 {offsets = [0, 7], sizes = [4, 1], strides = [1, 1]} : vector<4x18xf32> to vector<4x1xf32>
    %277 = vector.extract_strided_slice %269 {offsets = [1, 0], sizes = [1, 256], strides = [1, 1]} : vector<2x256xf32> to vector<1x256xf32>
    %278 = vector.broadcast %276 : vector<4x1xf32> to vector<4x256xf32>
    %279 = vector.broadcast %277 : vector<1x256xf32> to vector<4x256xf32>
    %280 = arith.mulf %278, %279 : vector<4x256xf32>
    %281 = arith.addf %275, %280 : vector<4x256xf32>
    %282 = vector.extract_strided_slice %2 {offsets = [0, 8], sizes = [4, 1], strides = [1, 1]} : vector<4x18xf32> to vector<4x1xf32>
    %283 = vector.extract_strided_slice %218 {offsets = [0, 0], sizes = [1, 256], strides = [1, 1]} : vector<2x256xf32> to vector<1x256xf32>
    %284 = vector.broadcast %282 : vector<4x1xf32> to vector<4x256xf32>
    %285 = vector.broadcast %283 : vector<1x256xf32> to vector<4x256xf32>
    %286 = arith.mulf %284, %285 : vector<4x256xf32>
    %287 = arith.addf %281, %286 : vector<4x256xf32>
    %288 = vector.extract_strided_slice %2 {offsets = [0, 9], sizes = [4, 1], strides = [1, 1]} : vector<4x18xf32> to vector<4x1xf32>
    %289 = vector.extract_strided_slice %218 {offsets = [1, 0], sizes = [1, 256], strides = [1, 1]} : vector<2x256xf32> to vector<1x256xf32>
    %290 = vector.broadcast %288 : vector<4x1xf32> to vector<4x256xf32>
    %291 = vector.broadcast %289 : vector<1x256xf32> to vector<4x256xf32>
    %292 = arith.mulf %290, %291 : vector<4x256xf32>
    %293 = arith.addf %287, %292 : vector<4x256xf32>
    %c255_i32_26 = arith.constant 255 : i32
    %294 = tpu.dynamic_rotate %218 by %c255_i32_26 dim 1 : vector<2x256xf32>, i32 -> vector<2x256xf32>
    %295 = vector.extract_strided_slice %4 {offsets = [5, 0], sizes = [1, 256], strides = [1, 1]} : vector<9x256xf32> to vector<1x256xf32>
    %296 = vector.broadcast %295 : vector<1x256xf32> to vector<2x256xf32>
    %297 = arith.mulf %294, %296 : vector<2x256xf32>
    %298 = vector.extract_strided_slice %2 {offsets = [0, 10], sizes = [4, 1], strides = [1, 1]} : vector<4x18xf32> to vector<4x1xf32>
    %299 = vector.extract_strided_slice %297 {offsets = [0, 0], sizes = [1, 256], strides = [1, 1]} : vector<2x256xf32> to vector<1x256xf32>
    %300 = vector.broadcast %298 : vector<4x1xf32> to vector<4x256xf32>
    %301 = vector.broadcast %299 : vector<1x256xf32> to vector<4x256xf32>
    %302 = arith.mulf %300, %301 : vector<4x256xf32>
    %303 = arith.addf %293, %302 : vector<4x256xf32>
    %304 = vector.extract_strided_slice %2 {offsets = [0, 11], sizes = [4, 1], strides = [1, 1]} : vector<4x18xf32> to vector<4x1xf32>
    %305 = vector.extract_strided_slice %297 {offsets = [1, 0], sizes = [1, 256], strides = [1, 1]} : vector<2x256xf32> to vector<1x256xf32>
    %306 = vector.broadcast %304 : vector<4x1xf32> to vector<4x256xf32>
    %307 = vector.broadcast %305 : vector<1x256xf32> to vector<4x256xf32>
    %308 = arith.mulf %306, %307 : vector<4x256xf32>
    %309 = arith.addf %303, %308 : vector<4x256xf32>
    %c241_i32_27 = arith.constant 241 : i32
    %310 = tpu.dynamic_rotate %218 by %c241_i32_27 dim 1 : vector<2x256xf32>, i32 -> vector<2x256xf32>
    %311 = vector.extract_strided_slice %4 {offsets = [6, 0], sizes = [1, 256], strides = [1, 1]} : vector<9x256xf32> to vector<1x256xf32>
    %312 = vector.broadcast %311 : vector<1x256xf32> to vector<2x256xf32>
    %313 = arith.mulf %310, %312 : vector<2x256xf32>
    %314 = vector.extract_strided_slice %2 {offsets = [0, 12], sizes = [4, 1], strides = [1, 1]} : vector<4x18xf32> to vector<4x1xf32>
    %315 = vector.extract_strided_slice %313 {offsets = [0, 0], sizes = [1, 256], strides = [1, 1]} : vector<2x256xf32> to vector<1x256xf32>
    %316 = vector.broadcast %314 : vector<4x1xf32> to vector<4x256xf32>
    %317 = vector.broadcast %315 : vector<1x256xf32> to vector<4x256xf32>
    %318 = arith.mulf %316, %317 : vector<4x256xf32>
    %319 = arith.addf %309, %318 : vector<4x256xf32>
    %320 = vector.extract_strided_slice %2 {offsets = [0, 13], sizes = [4, 1], strides = [1, 1]} : vector<4x18xf32> to vector<4x1xf32>
    %321 = vector.extract_strided_slice %313 {offsets = [1, 0], sizes = [1, 256], strides = [1, 1]} : vector<2x256xf32> to vector<1x256xf32>
    %322 = vector.broadcast %320 : vector<4x1xf32> to vector<4x256xf32>
    %323 = vector.broadcast %321 : vector<1x256xf32> to vector<4x256xf32>
    %324 = arith.mulf %322, %323 : vector<4x256xf32>
    %325 = arith.addf %319, %324 : vector<4x256xf32>
    %c240_i32_28 = arith.constant 240 : i32
    %326 = tpu.dynamic_rotate %218 by %c240_i32_28 dim 1 : vector<2x256xf32>, i32 -> vector<2x256xf32>
    %327 = vector.extract_strided_slice %4 {offsets = [7, 0], sizes = [1, 256], strides = [1, 1]} : vector<9x256xf32> to vector<1x256xf32>
    %328 = vector.broadcast %327 : vector<1x256xf32> to vector<2x256xf32>
    %329 = arith.mulf %326, %328 : vector<2x256xf32>
    %330 = vector.extract_strided_slice %2 {offsets = [0, 14], sizes = [4, 1], strides = [1, 1]} : vector<4x18xf32> to vector<4x1xf32>
    %331 = vector.extract_strided_slice %329 {offsets = [0, 0], sizes = [1, 256], strides = [1, 1]} : vector<2x256xf32> to vector<1x256xf32>
    %332 = vector.broadcast %330 : vector<4x1xf32> to vector<4x256xf32>
    %333 = vector.broadcast %331 : vector<1x256xf32> to vector<4x256xf32>
    %334 = arith.mulf %332, %333 : vector<4x256xf32>
    %335 = arith.addf %325, %334 : vector<4x256xf32>
    %336 = vector.extract_strided_slice %2 {offsets = [0, 15], sizes = [4, 1], strides = [1, 1]} : vector<4x18xf32> to vector<4x1xf32>
    %337 = vector.extract_strided_slice %329 {offsets = [1, 0], sizes = [1, 256], strides = [1, 1]} : vector<2x256xf32> to vector<1x256xf32>
    %338 = vector.broadcast %336 : vector<4x1xf32> to vector<4x256xf32>
    %339 = vector.broadcast %337 : vector<1x256xf32> to vector<4x256xf32>
    %340 = arith.mulf %338, %339 : vector<4x256xf32>
    %341 = arith.addf %335, %340 : vector<4x256xf32>
    %c239_i32_29 = arith.constant 239 : i32
    %342 = tpu.dynamic_rotate %218 by %c239_i32_29 dim 1 : vector<2x256xf32>, i32 -> vector<2x256xf32>
    %343 = vector.extract_strided_slice %4 {offsets = [8, 0], sizes = [1, 256], strides = [1, 1]} : vector<9x256xf32> to vector<1x256xf32>
    %344 = vector.broadcast %343 : vector<1x256xf32> to vector<2x256xf32>
    %345 = arith.mulf %342, %344 : vector<2x256xf32>
    %346 = vector.extract_strided_slice %2 {offsets = [0, 16], sizes = [4, 1], strides = [1, 1]} : vector<4x18xf32> to vector<4x1xf32>
    %347 = vector.extract_strided_slice %345 {offsets = [0, 0], sizes = [1, 256], strides = [1, 1]} : vector<2x256xf32> to vector<1x256xf32>
    %348 = vector.broadcast %346 : vector<4x1xf32> to vector<4x256xf32>
    %349 = vector.broadcast %347 : vector<1x256xf32> to vector<4x256xf32>
    %350 = arith.mulf %348, %349 : vector<4x256xf32>
    %351 = arith.addf %341, %350 : vector<4x256xf32>
    %352 = vector.extract_strided_slice %2 {offsets = [0, 17], sizes = [4, 1], strides = [1, 1]} : vector<4x18xf32> to vector<4x1xf32>
    %353 = vector.extract_strided_slice %345 {offsets = [1, 0], sizes = [1, 256], strides = [1, 1]} : vector<2x256xf32> to vector<1x256xf32>
    %354 = vector.broadcast %352 : vector<4x1xf32> to vector<4x256xf32>
    %355 = vector.broadcast %353 : vector<1x256xf32> to vector<4x256xf32>
    %356 = arith.mulf %354, %355 : vector<4x256xf32>
    %357 = arith.addf %351, %356 : vector<4x256xf32>
    %358 = vector.broadcast %3 : vector<4x1xf32> to vector<4x256xf32>
    %359 = arith.addf %357, %358 : vector<4x256xf32>
    %cst_30 = arith.constant 0.000000e+00 : f32
    %360 = vector.broadcast %cst_30 : f32 to vector<4x256xf32>
    %361 = arith.cmpf ogt, %359, %360 : vector<4x256xf32>
    %cst_31 = arith.constant 1.000000e-01 : f32
    %362 = vector.broadcast %cst_31 : f32 to vector<4x256xf32>
    %363 = arith.mulf %362, %359 : vector<4x256xf32>
    %364 = arith.select %361, %359, %363 : vector<4x256xi1>, vector<4x256xf32>
    %365 = arith.addf %364, %188 : vector<4x256xf32>
    %c1_32 = arith.constant 1 : index
    %c0_33 = arith.constant 0 : index
    %c0_34 = arith.constant 0 : index
    %366 = vector.load %arg6[%c1_32, %c0_33, %c0_34] : memref<2x4x256xf32, #tpu.memory_space<vmem>>, vector<1x4x256xf32>
    %367 = vector.shape_cast %366 : vector<1x4x256xf32> to vector<4x256xf32>
    %368 = vector.shape_cast %365 : vector<4x256xf32> to vector<1x4x256xf32>
    tpu.vector_store %arg6[%c1_32, %c0_33, %c0_34], %368 {strides = array<i32>} : memref<2x4x256xf32, #tpu.memory_space<vmem>>, vector<1x4x256xf32>,
    return
  }
}

</mosaic_0001>

<bundles_post_ra>
// kernel: tpu_custom_call.1
= control target key start
LH: loop header
LB: loop body
LE: loop exit
PB: predicated region body
PF: predicated region fallthrough
CT: control target
= control target key end

     0   :  { %11 = vsyncpa [#allocation3], 0  ;;  %s1762_s0 = inlined_call_operand.hbm [shape: f32[2,4,256], index: 0, kind: input, shape index: {}]   ;;  %s1763_s1 = inlined_call_operand.vmem [shape: f32[2,4], index: 1, kind: input, shape index: {}]   ;;  %s1764_s2 = inlined_call_operand.vmem [shape: f32[2,1], index: 2, kind: input, shape index: {}]   ;;  %s1765_s3 = inlined_call_operand.vmem [shape: f32[4,18], index: 3, kind: input, shape index: {}]   ;;  %s1766_s4 = inlined_call_operand.vmem [shape: f32[4,1], index: 4, kind: input, shape index: {}]   ;;  %s1767_s5 = inlined_call_operand.hbm [shape: f32[9,256], index: 5, kind: input, shape index: {}]   ;;  %s1768_s6 = inlined_call_operand.hbm [shape: f32[2,4,256], index: 6, kind: output, shape index: {}]  }
   0x1   :  { %12 = vsyncpa [#allocation6], 0 }
   0x2   :  { %13 = vsyncpa [#allocation4], 0  ;;  %s1169_s21 = smov [#allocation2]   ;;  %s1097_s25 = scalar_lea.hbm %s1762_s0, 256 }
   0x3   :  { %s19_s22 = sshll.u32 %s1169_s21, 4  ;;  %p1098_p0 = scmp.ne.s32.totalorder %s1762_s0, %s1097_s25  ;;  %s20_s22 = int_to_ptr.vmem [resolvable:$true] %s19_s22 }
   0x4   :  { %p1101_p1 = scmp.lt.u32.totalorder %s1097_s25, %s1762_s0 }
   0x6   :  { %p1103_p2 = pnand %p1101_p1, %p1098_p0 }
   0x8   :  { %1106 = shalt.err (!%p1103_p2)
}
   0x9   :  { %s1107_s30 = scalar_lea.vmem %s20_s22, 256  ;;  %p1112_p4 = scmp.lt.s32.totalorder %s20_s22, %s20_s22 }
   0xa   :  { %p1108_p3 = scmp.ne.s32.totalorder %s20_s22, %s1107_s30  ;;  %p1113_p5 = scmp.lt.s32.totalorder %s1107_s30, %s1107_s30 }
   0xc   :  { %p1114_p6 = por %p1113_p5, %p1112_p4 }
   0xe   :  { %p1115_p7 = pnand %p1114_p6, %p1108_p3 }
  0x10   :  { %1118 = shalt.err (!%p1115_p7)
}
  0x11   :  { %s1170_s7 = smov 128   ;;  %s1171_s8 = smov 8  }
  0x12   :  { %25 = dma.hbm_to_vmem [thread:$0]  %s1762_s0, 256, %s20_s22, [#allocation3], %s1170_s7, %s1170_s7, %s1171_s8  }
  0x13   :  { %s1172_s11 = smov [#allocation5]   ;;  %s1119_s15 = scalar_lea.hbm %s1767_s5, 512 }
  0x14   :  { %s39_s12 = sshll.u32 %s1172_s11, 4  ;;  %p1120_p8 = scmp.ne.s32.totalorder %s1767_s5, %s1119_s15  ;;  %s40_s12 = int_to_ptr.vmem [resolvable:$true] %s39_s12 }
  0x15   :  { %p1123_p9 = scmp.lt.u32.totalorder %s1119_s15, %s1767_s5 }
  0x17   :  { %p1125_p10 = pnand %p1123_p9, %p1120_p8 }
  0x19   :  { %1128 = shalt.err (!%p1125_p10)
}
  0x1a   :  { %s1129_s20 = scalar_lea.vmem %s40_s12, 512  ;;  %p1134_p12 = scmp.lt.s32.totalorder %s40_s12, %s40_s12 }
  0x1b   :  { %p1130_p11 = scmp.ne.s32.totalorder %s40_s12, %s1129_s20  ;;  %p1135_p13 = scmp.lt.s32.totalorder %s1129_s20, %s1129_s20 }
  0x1d   :  { %p1136_p0 = por %p1135_p13, %p1134_p12 }
  0x1f   :  { %p1137_p1 = pnand %p1136_p0, %p1130_p11 }
  0x21   :  { %1140 = shalt.err (!%p1137_p1)
}
  0x22   :  { %s1173_s0 = smov 256   ;;  %s1174_s21 = smov 16  }
  0x23   :  { %45 = dma.hbm_to_vmem [thread:$0]  %s1767_s5, 512, %s40_s12, [#allocation6], %s1173_s0, %s1173_s0, %s1174_s21  }
  0x24   :  { %1163 = dma.done.wait [#allocation3], 256  }
  0x25   :  { %1164 = vsyncadd [#allocation3], 4294967040 }
  0x26   :  { %1165 = dma.done.wait [#allocation6], 512  }
  0x27   :  { %1166 = vsyncadd [#allocation6], 4294966784  ;;  %v1175_v0 = vmov 2   ;;  %v1176_v1 = vmov 0   ;;  %v52_v2 = vld [vmem:[%s1763_s1] sm:$0x3]  ;;  %v67_v19 = vlaneseq }
  0x28   :  { %1072 = vset.pattern.permute.xlu1 %v1175_v0  ;;  %1070 = vset.pattern.permute.xlu0 %v1176_v1  ;;  %v1177_v3 = vmov 3   ;;  %v1178_v4 = vmov 1   ;;  %v53_v5 = vld [vmem:[%s1764_s2] sm:$0x3]  ;;  %v1179_v7 = vmov 4   ;;  %v1180_v8 = vmov 9  }
  0x29   :  { %114 = vperm.xlu1 %1072, %v52_v2   ;;  %63 = vperm.xlu0 %1070, %v52_v2   ;;  %v1274_v6 = vld [vmem:[%s1765_s3] sm:$0xf]  ;;  %v1181_v9 = vmov 5   ;;  %v1182_v10 = vmov 6   ;;  %v1183_v11 = vmov 10   ;;  %v1184_v12 = vmov 7  }
  0x2a   :  { %v1185_v13 = vmov 8   ;;  %v1186_v14 = vmov 11   ;;  %v1187_v15 = vmov 12   ;;  %v1188_v16 = vmov 13   ;;  %v1296_v23 = vld [vmem:[#allocation2] sm:$0xff]  ;;  %v1302_v26 = vld [vmem:[#allocation2 + $0x8] sm:$0xff] }
  0x2b   :  { %v1189_v17 = vmov 14   ;;  %v1190_v18 = vmov 15   ;;  %v68_v20 = vshrl.u32 %v67_v19, 7  ;;  %s1191_s1 = smov 17   ;;  %s1192_s2 = smov 15  }
  0x2c   :  { %s1193_s3 = smov 127   ;;  %s1196_s9 = smov 1  }
  0x2d   :  { %1073 = vset.pattern.permute.xlu1 %v1177_v3  ;;  %1071 = vset.pattern.permute.xlu0 %v1178_v4  ;;  %v1294_v21 = vsub.s32 0, %v68_v20  ;;  %v73_v22 = vsub.s32 4, %v68_v20  ;;  %v1298_v24 = vsub.s32 1, %v68_v20  ;;  %v1300_v25 = vsub.s32 5, %v68_v20  ;;  %s1198_s10 = smov 112   ;;  %s1199_s11 = smov 111  }
  0x2e   :  { %140 = vperm.xlu1 %1073, %v52_v2   ;;  %88 = vperm.xlu0 %1071, %v52_v2   ;;  %v1304_v27 = vsub.s32 2, %v68_v20  ;;  %v1306_v28 = vsub.s32 6, %v68_v20  ;;  %v1308_v29 = vsub.s32 3, %v68_v20  ;;  %v1310_v30 = vsub.s32 7, %v68_v20  ;;  %s1200_s12 = smov [#allocation7]  }
  0x2f   :  { %v70_v31 = vrot.slane %v1296_v23, %v1294_v21  ;;  %v74_v32 = vrot.slane %v1296_v23, %v73_v22  ;;  %v631_v33 = vrot.slane %v1302_v26, %v1294_v21  ;;  %v94_v34 = vrot.slane %v1296_v23, %v1298_v24  ;;  %s1023_s13 = sshll.u32 %s1200_s12, 4  ;;  %s1024_s13 = int_to_ptr.vmem [resolvable:$true] %s1023_s13 }
  0x30   :  { %v98_v35 = vrot.slane %v1296_v23, %v1300_v25  ;;  %v651_v36 = vrot.slane %v1302_v26, %v1298_v24  ;;  %v120_v37 = vrot.slane %v1296_v23, %v1304_v27  ;;  %v124_v38 = vrot.slane %v1296_v23, %v1306_v28  ;;  %s1141_s14 = scalar_lea.vmem %s1024_s13, 256  ;;  %p1146_p3 = scmp.lt.s32.totalorder %s1024_s13, %s1024_s13 }
  0x31   :  { %v673_v39 = vrot.slane %v1302_v26, %v1304_v27  ;;  %v146_v40 = vrot.slane %v1296_v23, %v1308_v29  ;;  %v150_v43 = vrot.slane %v1296_v23, %v1310_v30  ;;  %v80_v44 = vrot.slane %v70_v31, %v1294_v21  ;;  %p1142_p2 = scmp.ne.s32.totalorder %s1024_s13, %s1141_s14  ;;  %p1147_p4 = scmp.lt.s32.totalorder %s1141_s14, %s1141_s14 }
  0x32   :  { %1074 = vset.pattern.permute.xlu1 %v1176_v1  ;;  %1075 = vset.pattern.permute.xlu0 %v1176_v1  ;;  %v84_v45 = vrot.slane %v74_v32, %v1294_v21  ;;  %v695_v46 = vrot.slane %v1302_v26, %v1308_v29  ;;  %v641_v47 = vrot.slane %v631_v33, %v1294_v21 }
  0x33   :  { %167 = vperm.xlu1 %1074, %v53_v5   ;;  %199 = vperm.xlu0 %1075, %v1274_v6   ;;  %v104_v48 = vrot.slane %v94_v34, %v1298_v24  ;;  %v108_v49 = vrot.slane %v98_v35, %v1298_v24  ;;  %v661_v50 = vrot.slane %v651_v36, %v1298_v24  ;;  %p1148_p5 = por %p1147_p4, %p1146_p3 }
  0x34   :  { %v130_v51 = vrot.slane %v120_v37, %v1304_v27  ;;  %v134_v52 = vrot.slane %v124_v38, %v1304_v27  ;;  %v683_v53 = vrot.slane %v673_v39, %v1304_v27  ;;  %v156_v54 = vrot.slane %v146_v40, %v1308_v29 }
  0x35   :  { %v635_v55 = vrot.slane %v1302_v26, %v73_v22  ;;  %v160_v56 = vrot.slane %v150_v43, %v1308_v29  ;;  %v655_v59 = vrot.slane %v1302_v26, %v1300_v25  ;;  %v705_v61 = vrot.slane %v695_v46, %v1308_v29  ;;  %p1149_p6 = pnand %p1148_p5, %p1142_p2 }
  0x36   :  { %v677_v20 = vrot.slane %v1302_v26, %v1306_v28  ;;  %v699_v33 = vrot.slane %v1302_v26, %v1310_v30 }
  0x37   :  { %1076 = vset.pattern.permute.xlu1 %v1178_v4  ;;  %1078 = vset.pattern.permute.xlu0 %v1177_v3 }
  0x38   :  { %213 = vperm.xlu1 %1076, %v1274_v6   ;;  %262 = vperm.xlu0 %1078, %v1274_v6   ;;  %v687_v39 = vrot.slane %v677_v20, %v1304_v27 }
  0x3c   :  { %1077 = vset.pattern.permute.xlu1 %v1175_v0  ;;  %1079 = vset.pattern.permute.xlu0 %v1179_v7 }
  0x3d   :  { %246 = vperm.xlu1 %1077, %v1274_v6   ;;  %295 = vperm.xlu0 %1079, %v1274_v6  }
  0x41   :  { %1084 = vset.pattern.permute.xlu1 %v1180_v8  ;;  %1080 = vset.pattern.permute.xlu0 %v1181_v9 }
  0x42   :  { %392 = vperm.xlu1 %1084, %v1274_v6   ;;  %311 = vperm.xlu0 %1080, %v1274_v6  }
  0x46   :  { %1081 = vset.pattern.permute.xlu0 %v1182_v10  ;;  %1085 = vset.pattern.permute.xlu1 %v1183_v11 }
  0x47   :  { %344 = vperm.xlu0 %1081, %v1274_v6   ;;  %425 = vperm.xlu1 %1085, %v1274_v6  }
  0x4b   :  { %1082 = vset.pattern.permute.xlu0 %v1184_v12 }
  0x4c   :  { %360 = vperm.xlu0 %1082, %v1274_v6  }
  0x50   :  { %1083 = vset.pattern.permute.xlu0 %v1185_v13  ;;  %v665_v13 = vrot.slane %v655_v59, %v1298_v24 }
  0x51   :  { %376 = vperm.xlu0 %1083, %v1274_v6  }
  0x55   :  { %1086 = vset.pattern.permute.xlu0 %v1186_v14 }
  0x56   :  { %441 = vperm.xlu0 %1086, %v1274_v6  }
  0x5a   :  { %1087 = vset.pattern.permute.xlu0 %v1187_v15 }
  0x5b   :  { %474 = vperm.xlu0 %1087, %v1274_v6  }
  0x5f   :  { %1088 = vset.pattern.permute.xlu0 %v1188_v16 }
  0x60   :  { %490 = vperm.xlu0 %1088, %v1274_v6  }
  0x64   :  { %1089 = vset.pattern.permute.xlu0 %v1189_v17 }
  0x65   :  { %523 = vperm.xlu0 %1089, %v1274_v6  }
  0x69   :  { %1090 = vset.pattern.permute.xlu0 %v1190_v18  ;;  %v645_v18 = vrot.slane %v635_v55, %v1294_v21  ;;  %v1194_v55 = vmov 16  }
  0xa8   :  { %v64_v41 = vpop.permute.xlu0 %63  ;;  %v115_v42 = vpop.permute.xlu1 %114 }
  0xa9   :  { %v85_v57 = vmul.f32 %v80_v44, %v64_v41  ;;  %v86_v58 = vmul.f32 %v84_v45, %v64_v41  ;;  %v646_v63 = vmul.f32 %v641_v47, %v64_v41  ;;  %v135_v4 = vmul.f32 %v130_v51, %v115_v42 }
  0xaa   :  { %v136_v5 = vmul.f32 %v134_v52, %v115_v42  ;;  %v688_v7 = vmul.f32 %v683_v53, %v115_v42  ;;  %v647_v38 = vmul.f32 %v645_v18, %v64_v41  ;;  %v709_v44 = vrot.slane %v699_v33, %v1308_v29 }
  0xab   :  { %v689_v41 = vmul.f32 %v687_v39, %v115_v42 }
  0xad   :  { %v89_v60 = vpop.permute.xlu0 %88  ;;  %v141_v62 = vpop.permute.xlu1 %140 }
  0xae   :  { %v109_v0 = vmul.f32 %v104_v48, %v89_v60  ;;  %v110_v2 = vmul.f32 %v108_v49, %v89_v60  ;;  %v666_v3 = vmul.f32 %v661_v50, %v89_v60  ;;  %v161_v8 = vmul.f32 %v156_v54, %v141_v62 }
  0xaf   :  { %v162_v12 = vmul.f32 %v160_v56, %v141_v62  ;;  %v710_v14 = vmul.f32 %v705_v61, %v141_v62  ;;  %v667_v34 = vmul.f32 %v665_v13, %v89_v60  ;;  %v711_v49 = vmul.f32 %v709_v44, %v141_v62 }
  0xb0   :  { %v111_v9 = vadd.f32 %v109_v0, %v85_v57  ;;  %v112_v10 = vadd.f32 %v110_v2, %v86_v58  ;;  %v668_v11 = vadd.f32 %v666_v3, %v646_v63  ;;  %v1195_v57 = vmov 17   ;;  %v55_v58 = vld [vmem:[%s1766_s4] sm:$0xf]  ;;  %s1197_s4 = smov 113  }
  0xb1   :  { %v669_v45 = vadd.f32 %v667_v34, %v647_v38 }
  0xb2   :  { %v137_v15 = vadd.f32 %v135_v4, %v111_v9  ;;  %v138_v16 = vadd.f32 %v136_v5, %v112_v10  ;;  %v690_v17 = vadd.f32 %v688_v7, %v668_v11  ;;  %v168_v22 = vpop.permute.xlu1 %167  ;;  %v1440_v10 = vand.u32 127, %v67_v19  ;;  %v1442_v11 = vld [vmem:[#allocation5] sm:$0xff] }
  0xb3   :  { %v691_v50 = vadd.f32 %v689_v41, %v669_v45  ;;  %v1449_v13 = vrot.slane %v1442_v11, %v1294_v21 }
  0xb4   :  { %v163_v31 = vadd.f32 %v161_v8, %v137_v15  ;;  %v164_v32 = vadd.f32 %v162_v12, %v138_v16  ;;  %v712_v37 = vadd.f32 %v710_v14, %v690_v17  ;;  %v1444_v12 = vld [vmem:[#allocation5 + $0x8] sm:$0xff]  ;;  %vm184_vm4 = vcmp.lt.s32.totalorder %v1440_v10, 17 }
  0xb5   :  { %v713_v52 = vadd.f32 %v711_v49, %v691_v50  ;;  %v1453_v14 = vrot.slane %v1444_v12, %v1294_v21  ;;  %vm232_vm5 = vcmp.lt.s32.totalorder %v1440_v10, 16  ;;  %vm281_vm6 = vcmp.lt.s32.totalorder %v1440_v10, 15 }
  0xb6   :  { %v170_v35 = vadd.f32 %v168_v22, %v163_v31  ;;  %v171_v36 = vadd.f32 %v168_v22, %v164_v32  ;;  %v714_v48 = vadd.f32 %v712_v37, %v168_v22  ;;  %v1468_v31 = vrot.slane %v1444_v12, %v1298_v24 }
  0xb7   :  { %v715_v42 = vadd.f32 %v713_v52, %v168_v22  ;;  %v1420_v2 = vpop.permute.xlu1 %213  ;;  %v1464_v22 = vrot.slane %v1442_v11, %v1298_v24  ;;  %vm330_vm7 = vcmp.lt.s32.totalorder %v1440_v10, 1  ;;  %vm411_vm8 = vcmp.lt.s32.totalorder %v1440_v10, 127 }
  0xb8   :  { %vm172_vm0 = vcmp.gt.f32.partialorder %v170_v35, 0.0  ;;  %vm173_vm1 = vcmp.gt.f32.partialorder %v171_v36, 0.0  ;;  %v174_v40 = vmul.f32 0.1, %v170_v35  ;;  %v175_v43 = vmul.f32 0.1, %v171_v36 }
  0xb9   :  { %v718_v51 = vmul.f32 0.1, %v714_v48  ;;  %vm716_vm2 = vcmp.gt.f32.partialorder %v714_v48, 0.0  ;;  %v719_v54 = vmul.f32 0.1, %v715_v42  ;;  %vm717_vm3 = vcmp.gt.f32.partialorder %v715_v42, 0.0 }
  0xba   :  { %v1358_v46 = vsel %vm172_vm0, %v170_v35, %v174_v40  ;;  %v1360_v47 = vsel %vm173_vm1, %v171_v36, %v175_v43  ;;  %vm460_vm9 = vcmp.lt.s32.totalorder %v1440_v10, 113  ;;  %vm509_vm10 = vcmp.lt.s32.totalorder %v1440_v10, 112 }
  0xbb   :  { %180 = vrot.lane.b32.xlu1 %v1360_v47, %s1191_s1  ;;  %178 = vrot.lane.b32.xlu0 %v1358_v46, %s1191_s1  ;;  %v1368_v53 = vsel %vm716_vm2, %v714_v48, %v718_v51  ;;  %v1377_v56 = vsel %vm717_vm3, %v715_v42, %v719_v54  ;;  %v1491_v54 = vrot.slane %v1442_v11, %v1304_v27  ;;  %vm558_vm11 = vcmp.lt.s32.totalorder %v1440_v10, 111 }
  0xbc   :  { %v1426_v4 = vpop.permute.xlu1 %246 }
  0xbf   :  { %228 = vrot.lane.b32.xlu1 %v1358_v46, %s1174_s21  ;;  %230 = vrot.lane.b32.xlu0 %v1360_v47, %s1174_s21 }
  0xc1   :  { %v1431_v7 = vpop.permute.xlu1 %392 }
  0xc3   :  { %277 = vrot.lane.b32.xlu1 %v1358_v46, %s1192_s2  ;;  %752 = vrot.lane.b32.xlu0 %v1368_v53, %s1174_s21 }
  0xc6   :  { %v1435_v8 = vpop.permute.xlu1 %425 }
  0xc7   :  { %279 = vrot.lane.b32.xlu1 %v1360_v47, %s1192_s2  ;;  %539 = vperm.xlu0 %1090, %v1274_v6  }
  0xcb   :  { %722 = vrot.lane.b32.xlu1 %v1368_v53, %s1191_s1  ;;  %407 = vrot.lane.b32.xlu0 %v1358_v46, %s1193_s3 }
  0xcc   :  { %1091 = vset.pattern.permute.xlu0 %v1194_v55  ;;  %v1495_v55 = vrot.slane %v1444_v12, %v1304_v27 }
  0xcf   :  { %724 = vrot.lane.b32.xlu1 %v1377_v56, %s1191_s1  ;;  %572 = vperm.xlu0 %1091, %v1274_v6  }
  0xd3   :  { %754 = vrot.lane.b32.xlu1 %v1377_v56, %s1174_s21  ;;  %1092 = vset.pattern.permute.xlu0 %v1195_v57 }
  0xd4   :  { %588 = vperm.xlu0 %1092, %v1274_v6   ;;  %v1394_v6 = vpop.permute.xlu0 %199 }
  0xd7   :  { %784 = vrot.lane.b32.xlu1 %v1368_v53, %s1192_s2 }
  0xd8   :  { %1093 = vset.pattern.permute.xlu0 %v1176_v1  ;;  %v1397_v59 = vpop.permute.xlu0 %262 }
  0xd9   :  { %605 = vperm.xlu0 %1093, %v55_v58  }
  0xdb   :  { %786 = vrot.lane.b32.xlu1 %v1377_v56, %s1192_s2 }
  0xdc   :  { %v1401_v1 = vpop.permute.xlu0 %295 }
  0xdf   :  { %326 = vrot.lane.b32.xlu1 %v1358_v46, %s1196_s9 }
  0xe0   :  { %v1404_v60 = vpop.permute.xlu0 %311 }
  0xe3   :  { %328 = vrot.lane.b32.xlu1 %v1360_v47, %s1196_s9 }
  0xe4   :  { %v1408_v61 = vpop.permute.xlu0 %344 }
  0xe7   :  { %816 = vrot.lane.b32.xlu1 %v1368_v53, %s1196_s9 }
  0xe8   :  { %v1411_v62 = vpop.permute.xlu0 %360 }
  0xeb   :  { %818 = vrot.lane.b32.xlu1 %v1377_v56, %s1196_s9 }
  0xec   :  { %v1415_v63 = vpop.permute.xlu0 %376 }
  0xef   :  { %409 = vrot.lane.b32.xlu1 %v1360_v47, %s1193_s3 }
  0xf0   :  { %v1418_v0 = vpop.permute.xlu0 %441 }
  0xf3   :  { %872 = vrot.lane.b32.xlu1 %v1368_v53, %s1193_s3 }
  0xf4   :  { %v1424_v3 = vpop.permute.xlu0 %474 }
  0xf7   :  { %874 = vrot.lane.b32.xlu1 %v1377_v56, %s1193_s3 }
  0xf8   :  { %v1429_v5 = vpop.permute.xlu0 %490 }
  0xfb   :  { %456 = vrot.lane.b32.xlu1 %v1358_v46, %s1197_s4 }
  0xfc   :  { %v1437_v9 = vpop.permute.xlu0 %523 }
  0xff   :  { %458 = vrot.lane.b32.xlu1 %v1360_v47, %s1197_s4 }
 0x103   :  { %904 = vrot.lane.b32.xlu1 %v1368_v53, %s1197_s4 }
 0x107   :  { %906 = vrot.lane.b32.xlu1 %v1377_v56, %s1197_s4 }
 0x10b   :  { %505 = vrot.lane.b32.xlu1 %v1358_v46, %s1198_s10 }
 0x10f   :  { %507 = vrot.lane.b32.xlu1 %v1360_v47, %s1198_s10 }
 0x113   :  { %936 = vrot.lane.b32.xlu1 %v1368_v53, %s1198_s10 }
 0x117   :  { %938 = vrot.lane.b32.xlu1 %v1377_v56, %s1198_s10 }
 0x11b   :  { %554 = vrot.lane.b32.xlu1 %v1358_v46, %s1199_s11 }
 0x11f   :  { %556 = vrot.lane.b32.xlu1 %v1360_v47, %s1199_s11 }
 0x123   :  { %968 = vrot.lane.b32.xlu1 %v1368_v53, %s1199_s11 }
 0x127   :  { %970 = vrot.lane.b32.xlu1 %v1377_v56, %s1199_s11 }
 0x12d   :  { %v181_v15 = vpop.permute.xlu1 %180  ;;  %v179_v16 = vpop.permute.xlu0 %178 }
 0x12e   :  { %v185_v19 = vsel %vm184_vm4, %v179_v16, %v181_v15  ;;  %v186_v17 = vsel %vm184_vm4, %v181_v15, %v179_v16 }
 0x12f   :  { %v195_v18 = vmul.f32 %v1449_v13, %v186_v17  ;;  %v196_v20 = vmul.f32 %v1453_v14, %v185_v19 }
 0x131   :  { %v205_v32 = vrot.slane %v195_v18, %v1294_v21  ;;  %v209_v33 = vrot.slane %v196_v20, %v1294_v21  ;;  %v219_v34 = vrot.slane %v195_v18, %v1298_v24  ;;  %v223_v35 = vrot.slane %v196_v20, %v1298_v24  ;;  %v229_v36 = vpop.permute.xlu1 %228  ;;  %v231_v37 = vpop.permute.xlu0 %230 }
 0x132   :  { %v233_v38 = vsel %vm232_vm5, %v229_v36, %v231_v37  ;;  %v234_v39 = vsel %vm232_vm5, %v231_v37, %v229_v36 }
 0x133   :  { %v210_v40 = vmul.f32 %v205_v32, %v1394_v6  ;;  %v211_v43 = vmul.f32 %v209_v33, %v1394_v6  ;;  %v224_v44 = vmul.f32 %v219_v34, %v1420_v2  ;;  %v225_v45 = vmul.f32 %v223_v35, %v1420_v2 }
 0x134   :  { %v243_v48 = vmul.f32 %v1464_v22, %v234_v39  ;;  %v244_v41 = vmul.f32 %v1468_v31, %v233_v38 }
 0x135   :  { %v278_v49 = vpop.permute.xlu1 %277  ;;  %v226_v57 = vadd.f32 %v224_v44, %v210_v40  ;;  %v227_v58 = vadd.f32 %v225_v45, %v211_v43 }
 0x136   :  { %v252_v50 = vrot.slane %v243_v48, %v1294_v21  ;;  %v256_v51 = vrot.slane %v244_v41, %v1294_v21  ;;  %v268_v52 = vrot.slane %v243_v48, %v1298_v24  ;;  %v272_v42 = vrot.slane %v244_v41, %v1298_v24 }
 0x138   :  { %v257_v15 = vmul.f32 %v252_v50, %v1426_v4  ;;  %v258_v16 = vmul.f32 %v256_v51, %v1426_v4  ;;  %v273_v19 = vmul.f32 %v268_v52, %v1397_v59  ;;  %v274_v17 = vmul.f32 %v272_v42, %v1397_v59 }
 0x139   :  { %v280_v18 = vpop.permute.xlu1 %279 }
 0x13a   :  { %v259_v20 = vadd.f32 %v257_v15, %v226_v57  ;;  %v260_v32 = vadd.f32 %v258_v16, %v227_v58  ;;  %v282_v33 = vsel %vm281_vm6, %v278_v49, %v280_v18  ;;  %v283_v27 = vsel %vm281_vm6, %v280_v18, %v278_v49 }
 0x13b   :  { %v292_v34 = vmul.f32 %v1491_v54, %v283_v27  ;;  %v293_v35 = vmul.f32 %v1495_v55, %v282_v33  ;;  %v1522_v18 = vrot.slane %v1444_v12, %v1308_v29 }
 0x13c   :  { %v275_v36 = vadd.f32 %v273_v19, %v259_v20  ;;  %v276_v37 = vadd.f32 %v274_v17, %v260_v32  ;;  %v1518_v17 = vrot.slane %v1442_v11, %v1308_v29 }
 0x13d   :  { %v301_v38 = vrot.slane %v292_v34, %v1294_v21  ;;  %v305_v39 = vrot.slane %v293_v35, %v1294_v21  ;;  %v317_v40 = vrot.slane %v292_v34, %v1298_v24  ;;  %v321_v43 = vrot.slane %v293_v35, %v1298_v24  ;;  %v723_v44 = vpop.permute.xlu1 %722 }
 0x13f   :  { %v306_v45 = vmul.f32 %v301_v38, %v1401_v1  ;;  %v307_v48 = vmul.f32 %v305_v39, %v1401_v1  ;;  %v322_v50 = vmul.f32 %v317_v40, %v1404_v60  ;;  %v323_v51 = vmul.f32 %v321_v43, %v1404_v60 }
 0x141   :  { %v308_v41 = vadd.f32 %v306_v45, %v275_v36  ;;  %v309_v49 = vadd.f32 %v307_v48, %v276_v37  ;;  %v725_v52 = vpop.permute.xlu1 %724  ;;  %v398_v48 = vrot.slane %v1358_v46, %v1298_v24 }
 0x142   :  { %v726_v39 = vsel %vm184_vm4, %v723_v44, %v725_v52  ;;  %v727_v40 = vsel %vm184_vm4, %v725_v52, %v723_v44 }
 0x143   :  { %v324_v42 = vadd.f32 %v322_v50, %v308_v41  ;;  %v325_v57 = vadd.f32 %v323_v51, %v309_v49  ;;  %v402_v41 = vrot.slane %v1360_v47, %v1298_v24  ;;  %v382_v49 = vrot.slane %v1358_v46, %v1294_v21 }
 0x144   :  { %v386_v50 = vrot.slane %v1360_v47, %v1294_v21 }
 0x145   :  { %v755_v58 = vpop.permute.xlu1 %754 }
 0x149   :  { %v785_v15 = vpop.permute.xlu1 %784 }
 0x14d   :  { %v787_v16 = vpop.permute.xlu1 %786 }
 0x151   :  { %v327_v19 = vpop.permute.xlu1 %326 }
 0x155   :  { %v329_v20 = vpop.permute.xlu1 %328 }
 0x156   :  { %v331_v32 = vsel %vm330_vm7, %v327_v19, %v329_v20  ;;  %v332_v33 = vsel %vm330_vm7, %v329_v20, %v327_v19 }
 0x157   :  { %v341_v27 = vmul.f32 %v1518_v17, %v332_v33  ;;  %v342_v34 = vmul.f32 %v1522_v18, %v331_v32  ;;  %v387_v32 = vmul.f32 %v382_v49, %v1415_v63  ;;  %v388_v33 = vmul.f32 %v386_v50, %v1415_v63 }
 0x159   :  { %v350_v35 = vrot.slane %v341_v27, %v1294_v21  ;;  %v354_v36 = vrot.slane %v342_v34, %v1294_v21  ;;  %v366_v37 = vrot.slane %v341_v27, %v1298_v24  ;;  %v370_v29 = vrot.slane %v342_v34, %v1298_v24  ;;  %v817_v38 = vpop.permute.xlu1 %816  ;;  %v753_v27 = vpop.permute.xlu0 %752 }
 0x15a   :  { %v728_v34 = vmul.f32 %v727_v40, %v1449_v13  ;;  %v756_v46 = vsel %vm232_vm5, %v753_v27, %v755_v58  ;;  %v757_v47 = vsel %vm232_vm5, %v755_v58, %v753_v27 }
 0x15b   :  { %v355_v43 = vmul.f32 %v350_v35, %v1408_v61  ;;  %v356_v45 = vmul.f32 %v354_v36, %v1408_v61  ;;  %v371_v44 = vmul.f32 %v366_v37, %v1411_v62  ;;  %v372_v52 = vmul.f32 %v370_v29, %v1411_v62 }
 0x15c   :  { %v729_v35 = vmul.f32 %v726_v39, %v1453_v14  ;;  %v403_v36 = vmul.f32 %v398_v48, %v1431_v7  ;;  %v404_v37 = vmul.f32 %v402_v41, %v1431_v7  ;;  %v733_v49 = vrot.slane %v728_v34, %v1294_v21 }
 0x15d   :  { %v357_v51 = vadd.f32 %v355_v43, %v324_v42  ;;  %v358_v19 = vadd.f32 %v356_v45, %v325_v57  ;;  %v819_v20 = vpop.permute.xlu1 %818  ;;  %v758_v14 = vmul.f32 %v757_v47, %v1464_v22  ;;  %v759_v39 = vmul.f32 %v756_v46, %v1468_v31 }
 0x15e   :  { %v737_v13 = vrot.slane %v729_v35, %v1294_v21  ;;  %v743_v40 = vrot.slane %v728_v34, %v1298_v24  ;;  %v747_v58 = vrot.slane %v729_v35, %v1298_v24  ;;  %v789_v22 = vsel %vm281_vm6, %v787_v16, %v785_v15 }
 0x15f   :  { %v373_v42 = vadd.f32 %v371_v44, %v357_v51  ;;  %v374_v57 = vadd.f32 %v372_v52, %v358_v19  ;;  %v763_v51 = vrot.slane %v758_v14, %v1294_v21  ;;  %v767_v19 = vrot.slane %v759_v39, %v1294_v21 }
 0x160   :  { %v788_v44 = vsel %vm281_vm6, %v785_v15, %v787_v16  ;;  %v738_v31 = vmul.f32 %v733_v49, %v1394_v6  ;;  %v739_v52 = vmul.f32 %v737_v13, %v1394_v6  ;;  %v790_v27 = vmul.f32 %v789_v22, %v1491_v54 }
 0x161   :  { %v389_v29 = vadd.f32 %v387_v32, %v373_v42  ;;  %v390_v43 = vadd.f32 %v388_v33, %v374_v57  ;;  %v410_v45 = vpop.permute.xlu1 %409  ;;  %v748_v32 = vmul.f32 %v743_v40, %v1420_v2  ;;  %v749_v33 = vmul.f32 %v747_v58, %v1420_v2 }
 0x162   :  { %v791_v34 = vmul.f32 %v788_v44, %v1495_v55  ;;  %v768_v46 = vmul.f32 %v763_v51, %v1426_v4  ;;  %v769_v47 = vmul.f32 %v767_v19, %v1426_v4  ;;  %v775_v15 = vrot.slane %v758_v14, %v1298_v24  ;;  %v1594_v4 = vpop.permute.xlu0 %539 }
 0x163   :  { %v1566_v50 = vadd.f32 %v403_v36, %v389_v29  ;;  %v1568_v48 = vadd.f32 %v404_v37, %v390_v43  ;;  %v750_v42 = vadd.f32 %v748_v32, %v738_v31  ;;  %v751_v57 = vadd.f32 %v749_v33, %v739_v52 }
 0x164   :  { %v779_v16 = vrot.slane %v759_v39, %v1298_v24  ;;  %v820_v6 = vsel %vm330_vm7, %v817_v38, %v819_v20  ;;  %v821_v2 = vsel %vm330_vm7, %v819_v20, %v817_v38  ;;  %v795_v54 = vrot.slane %v790_v27, %v1294_v21 }
 0x165   :  { %v1570_v41 = vpop.permute.xlu1 %872  ;;  %v799_v55 = vrot.slane %v791_v34, %v1294_v21  ;;  %v770_v37 = vadd.f32 %v768_v46, %v750_v42  ;;  %v771_v29 = vadd.f32 %v769_v47, %v751_v57  ;;  %v822_v43 = vmul.f32 %v821_v2, %v1518_v17 }
 0x166   :  { %v823_v49 = vmul.f32 %v820_v6, %v1522_v18  ;;  %v780_v13 = vmul.f32 %v775_v15, %v1397_v59  ;;  %v781_v14 = vmul.f32 %v779_v16, %v1397_v59  ;;  %v800_v39 = vmul.f32 %v795_v54, %v1401_v1  ;;  %v408_v44 = vpop.permute.xlu0 %407 }
 0x167   :  { %v801_v38 = vmul.f32 %v799_v55, %v1401_v1  ;;  %v807_v51 = vrot.slane %v790_v27, %v1298_v24  ;;  %v811_v19 = vrot.slane %v791_v34, %v1298_v24  ;;  %v827_v17 = vrot.slane %v822_v43, %v1294_v21 }
 0x168   :  { %v782_v40 = vadd.f32 %v780_v13, %v770_v37  ;;  %v783_v58 = vadd.f32 %v781_v14, %v771_v29  ;;  %v831_v18 = vrot.slane %v823_v49, %v1294_v21  ;;  %v417_v59 = vrot.slane %v1442_v11, %v1300_v25 }
 0x169   :  { %v875_v35 = vpop.permute.xlu1 %874  ;;  %v421_v1 = vrot.slane %v1444_v12, %v1300_v25  ;;  %v412_v52 = vsel %vm411_vm8, %v408_v44, %v410_v45  ;;  %v413_v32 = vsel %vm411_vm8, %v410_v45, %v408_v44  ;;  %v812_v27 = vmul.f32 %v807_v51, %v1404_v60 }
 0x16a   :  { %v802_v22 = vadd.f32 %v800_v39, %v782_v40  ;;  %v803_v31 = vadd.f32 %v801_v38, %v783_v58  ;;  %v813_v34 = vmul.f32 %v811_v19, %v1404_v60  ;;  %v832_v46 = vmul.f32 %v827_v17, %v1408_v61 }
 0x16b   :  { %v833_v47 = vmul.f32 %v831_v18, %v1408_v61  ;;  %v422_v42 = vmul.f32 %v417_v59, %v412_v52  ;;  %v423_v57 = vmul.f32 %v421_v1, %v413_v32  ;;  %v839_v16 = vrot.slane %v822_v43, %v1298_v24 }
 0x16c   :  { %v814_v25 = vadd.f32 %v812_v27, %v802_v22  ;;  %v815_v15 = vadd.f32 %v813_v34, %v803_v31  ;;  %v843_v6 = vrot.slane %v823_v49, %v1298_v24  ;;  %v863_v45 = vrot.slane %v1368_v53, %v1298_v24 }
 0x16d   :  { %v457_v36 = vpop.permute.xlu1 %456  ;;  %v876_v61 = vsel %vm411_vm8, %v1570_v41, %v875_v35  ;;  %v877_v55 = vsel %vm411_vm8, %v875_v35, %v1570_v41  ;;  %v867_v37 = vrot.slane %v1377_v56, %v1298_v24  ;;  %v851_v29 = vrot.slane %v1368_v53, %v1294_v21 }
 0x16e   :  { %v834_v54 = vadd.f32 %v832_v46, %v814_v25  ;;  %v835_v60 = vadd.f32 %v833_v47, %v815_v15  ;;  %v431_v43 = vrot.slane %v422_v42, %v1294_v21  ;;  %v435_v49 = vrot.slane %v423_v57, %v1294_v21 }
 0x16f   :  { %v844_v13 = vmul.f32 %v839_v16, %v1411_v62  ;;  %v845_v14 = vmul.f32 %v843_v6, %v1411_v62  ;;  %v466_v39 = vrot.slane %v1442_v11, %v1306_v28  ;;  %v470_v41 = vrot.slane %v1444_v12, %v1306_v28 }
 0x170   :  { %v878_v38 = vmul.f32 %v876_v61, %v417_v59  ;;  %v879_v40 = vmul.f32 %v877_v55, %v421_v1  ;;  %v868_v51 = vmul.f32 %v863_v45, %v1431_v7  ;;  %v855_v62 = vrot.slane %v1377_v56, %v1294_v21 }
 0x171   :  { %v459_v20 = vpop.permute.xlu1 %458  ;;  %v846_v19 = vadd.f32 %v844_v13, %v834_v54  ;;  %v847_v17 = vadd.f32 %v845_v14, %v835_v60  ;;  %v869_v18 = vmul.f32 %v867_v37, %v1431_v7  ;;  %v856_v28 = vmul.f32 %v851_v29, %v1415_v63 }
 0x172   :  { %v461_v53 = vsel %vm460_vm9, %v457_v36, %v459_v20  ;;  %v462_v58 = vsel %vm460_vm9, %v459_v20, %v457_v36  ;;  %v436_v44 = vmul.f32 %v431_v43, %v1435_v8  ;;  %v437_v59 = vmul.f32 %v435_v49, %v1435_v8 }
 0x173   :  { %v857_v1 = vmul.f32 %v855_v62, %v1415_v63  ;;  %v471_v22 = vmul.f32 %v466_v39, %v461_v53  ;;  %v472_v31 = vmul.f32 %v470_v41, %v462_v58  ;;  %v447_v20 = vrot.slane %v422_v42, %v1298_v24 }
 0x174   :  { %v451_v56 = vrot.slane %v423_v57, %v1298_v24  ;;  %v883_v52 = vrot.slane %v878_v38, %v1294_v21  ;;  %v887_v7 = vrot.slane %v879_v40, %v1294_v21  ;;  %v858_v32 = vadd.f32 %v856_v28, %v846_v19 }
 0x175   :  { %v905_v33 = vpop.permute.xlu1 %904  ;;  %v859_v27 = vadd.f32 %v857_v1, %v847_v17  ;;  %v515_v34 = vrot.slane %v1442_v11, %v1310_v30  ;;  %v519_v63 = vrot.slane %v1444_v12, %v1310_v30  ;;  %v438_v46 = vadd.f32 %v436_v44, %v1566_v50 }
 0x176   :  { %v439_v47 = vadd.f32 %v437_v59, %v1568_v48  ;;  %v480_v25 = vrot.slane %v471_v22, %v1294_v21  ;;  %v484_v15 = vrot.slane %v472_v31, %v1294_v21  ;;  %v452_v50 = vmul.f32 %v447_v20, %v1418_v0 }
 0x177   :  { %v453_v48 = vmul.f32 %v451_v56, %v1418_v0  ;;  %v888_v16 = vmul.f32 %v883_v52, %v1435_v8  ;;  %v889_v6 = vmul.f32 %v887_v7, %v1435_v8  ;;  %v870_v45 = vadd.f32 %v868_v51, %v858_v32 }
 0x178   :  { %v871_v54 = vadd.f32 %v869_v18, %v859_v27  ;;  %v895_v55 = vrot.slane %v878_v38, %v1298_v24  ;;  %v899_v37 = vrot.slane %v879_v40, %v1298_v24  ;;  %v485_v49 = vmul.f32 %v480_v25, %v1424_v3 }
 0x179   :  { %v907_v2 = vpop.permute.xlu1 %906  ;;  %v486_v13 = vmul.f32 %v484_v15, %v1424_v3  ;;  %v496_v8 = vrot.slane %v471_v22, %v1298_v24  ;;  %v500_v58 = vrot.slane %v472_v31, %v1298_v24 }
 0x17a   :  { %v908_v11 = vsel %vm460_vm9, %v905_v33, %v907_v2  ;;  %v909_v30 = vsel %vm460_vm9, %v907_v2, %v905_v33  ;;  %v454_v33 = vadd.f32 %v452_v50, %v438_v46  ;;  %v455_v2 = vadd.f32 %v453_v48, %v439_v47  ;;  %v1037_v46 = vld [vmem:[#allocation5 + $0x18] ss:$0 sm:$0xff] }
 0x17b   :  { %v910_v29 = vmul.f32 %v908_v11, %v466_v39  ;;  %v911_v43 = vmul.f32 %v909_v30, %v470_v41  ;;  %v891_v53 = vadd.f32 %v889_v6, %v871_v54  ;;  %v900_v40 = vmul.f32 %v895_v55, %v1418_v0 }
 0x17c   :  { %v901_v62 = vmul.f32 %v899_v37, %v1418_v0  ;;  %v487_v18 = vadd.f32 %v485_v49, %v454_v33  ;;  %v488_v28 = vadd.f32 %v486_v13, %v455_v2  ;;  %v502_v20 = vmul.f32 %v500_v58, %v1429_v5 }
 0x17d   :  { %v506_v35 = vpop.permute.xlu1 %505  ;;  %v915_v19 = vrot.slane %v910_v29, %v1294_v21  ;;  %v919_v17 = vrot.slane %v911_v43, %v1294_v21  ;;  %v931_v25 = vrot.slane %v911_v43, %v1298_v24 }
 0x17e   :  { %v903_v1 = vadd.f32 %v901_v62, %v891_v53 }
 0x17f   :  { %v920_v52 = vmul.f32 %v915_v19, %v1424_v3  ;;  %v921_v7 = vmul.f32 %v919_v17, %v1424_v3  ;;  %v933_v49 = vmul.f32 %v931_v25, %v1429_v5 }
 0x181   :  { %v508_v36 = vpop.permute.xlu1 %507  ;;  %v923_v54 = vadd.f32 %v921_v7, %v903_v1 }
 0x182   :  { %v510_v42 = vsel %vm509_vm10, %v506_v35, %v508_v36  ;;  %v511_v57 = vsel %vm509_vm10, %v508_v36, %v506_v35  ;;  %v890_v35 = vadd.f32 %v888_v16, %v870_v45  ;;  %v501_v36 = vmul.f32 %v496_v8, %v1429_v5 }
 0x183   :  { %v520_v60 = vmul.f32 %v515_v34, %v510_v42  ;;  %v521_v61 = vmul.f32 %v519_v63, %v511_v57  ;;  %v504_v42 = vadd.f32 %v502_v20, %v488_v28  ;;  %v927_v57 = vrot.slane %v910_v29, %v1298_v24 }
 0x184   :  { %v902_v59 = vadd.f32 %v900_v40, %v890_v35  ;;  %v503_v47 = vadd.f32 %v501_v36, %v487_v18 }
 0x185   :  { %v937_v12 = vpop.permute.xlu1 %936  ;;  %v529_v51 = vrot.slane %v520_v60, %v1294_v21  ;;  %v533_v38 = vrot.slane %v521_v61, %v1294_v21  ;;  %v545_v32 = vrot.slane %v520_v60, %v1298_v24  ;;  %v549_v27 = vrot.slane %v521_v61, %v1298_v24 }
 0x186   :  { %v922_v45 = vadd.f32 %v920_v52, %v902_v59  ;;  %v932_v2 = vmul.f32 %v927_v57, %v1429_v5 }
 0x187   :  { %v534_v0 = vmul.f32 %v529_v51, %v1437_v9  ;;  %v535_v56 = vmul.f32 %v533_v38, %v1437_v9  ;;  %v550_v60 = vmul.f32 %v545_v32, %v1594_v4  ;;  %v551_v61 = vmul.f32 %v549_v27, %v1594_v4 }
 0x188   :  { %v934_v38 = vadd.f32 %v932_v2, %v922_v45 }
 0x189   :  { %v939_v14 = vpop.permute.xlu1 %938  ;;  %v536_v50 = vadd.f32 %v534_v0, %v503_v47  ;;  %v537_v48 = vadd.f32 %v535_v56, %v504_v42 }
 0x18a   :  { %v940_v39 = vsel %vm509_vm10, %v937_v12, %v939_v14  ;;  %v941_v41 = vsel %vm509_vm10, %v939_v14, %v937_v12 }
 0x18b   :  { %v1696_v22 = vmul.f32 %v940_v39, %v515_v34  ;;  %v1698_v31 = vmul.f32 %v941_v41, %v519_v63  ;;  %v1036_v34 = vld [vmem:[#allocation5 + $0x10] ss:$0 sm:$0xff]  ;;  %v573_v63 = vpop.permute.xlu0 %572  ;;  %v552_v53 = vadd.f32 %v550_v60, %v536_v50  ;;  %v553_v8 = vadd.f32 %v551_v61, %v537_v48 }
 0x18c   :  { %v935_v39 = vadd.f32 %v933_v49, %v923_v54 }
 0x18d   :  { %v555_v44 = vpop.permute.xlu1 %554  ;;  %v947_v11 = vrot.slane %v1696_v22, %v1294_v21  ;;  %v951_v3 = vrot.slane %v1698_v31, %v1294_v21  ;;  %v959_v41 = vrot.slane %v1696_v22, %v1298_v24  ;;  %v963_v40 = vrot.slane %v1698_v31, %v1298_v24 }
 0x18f   :  { %v952_v13 = vmul.f32 %v947_v11, %v1437_v9  ;;  %v953_v14 = vmul.f32 %v951_v3, %v1437_v9  ;;  %v589_v35 = vpop.permute.xlu0 %588  ;;  %v964_v31 = vmul.f32 %v959_v41, %v1594_v4  ;;  %v965_v56 = vmul.f32 %v963_v40, %v1594_v4 }
 0x191   :  { %v557_v15 = vpop.permute.xlu1 %556  ;;  %v954_v28 = vadd.f32 %v952_v13, %v934_v38  ;;  %v955_v9 = vadd.f32 %v953_v14, %v935_v39 }
 0x192   :  { %v559_v30 = vsel %vm558_vm11, %v555_v44, %v557_v15  ;;  %v560_v12 = vsel %vm558_vm11, %v557_v15, %v555_v44 }
 0x193   :  { %v569_v16 = vmul.f32 %v1036_v34, %v559_v30  ;;  %v570_v6 = vmul.f32 %v1037_v46, %v560_v12  ;;  %v606_v0 = vpop.permute.xlu0 %605  ;;  %v967_v42 = vadd.f32 %v965_v56, %v955_v9 }
 0x195   :  { %v578_v55 = vrot.slane %v569_v16, %v1294_v21  ;;  %v582_v37 = vrot.slane %v570_v6, %v1294_v21  ;;  %v594_v29 = vrot.slane %v569_v16, %v1298_v24  ;;  %v598_v43 = vrot.slane %v570_v6, %v1298_v24  ;;  %v969_v33 = vpop.permute.xlu1 %968 }
 0x197   :  { %v583_v58 = vmul.f32 %v578_v55, %v573_v63  ;;  %v584_v51 = vmul.f32 %v582_v37, %v573_v63  ;;  %v599_v62 = vmul.f32 %v594_v29, %v589_v35  ;;  %v600_v19 = vmul.f32 %v598_v43, %v589_v35  ;;  %v1096_v43 = vld [vmem:[#allocation2 + $0x8] sm:$0xff] }
 0x199   :  { %v971_v5 = vpop.permute.xlu1 %970  ;;  %v585_v17 = vadd.f32 %v583_v58, %v552_v53  ;;  %v586_v18 = vadd.f32 %v584_v51, %v553_v8 }
 0x19a   :  { %v972_v44 = vsel %vm558_vm11, %v969_v33, %v971_v5  ;;  %v973_v59 = vsel %vm558_vm11, %v971_v5, %v969_v33 }
 0x19b   :  { %v974_v1 = vmul.f32 %v1036_v34, %v972_v44  ;;  %v975_v36 = vmul.f32 %v1037_v46, %v973_v59  ;;  %v601_v20 = vadd.f32 %v599_v62, %v585_v17  ;;  %v602_v22 = vadd.f32 %v600_v19, %v586_v18 }
 0x19c   :  { %v616_v34 = vcombine.high %v1296_v23, %v1296_v23  ;;  %v966_v46 = vadd.f32 %v964_v31, %v954_v28 }
 0x19d   :  { %v979_v52 = vrot.slane %v974_v1, %v1294_v21  ;;  %v983_v7 = vrot.slane %v975_v36, %v1294_v21  ;;  %v991_v32 = vrot.slane %v974_v1, %v1298_v24  ;;  %v995_v27 = vrot.slane %v975_v36, %v1298_v24 }
 0x19e   :  { %v608_v47 = vadd.f32 %v606_v0, %v601_v20  ;;  %v609_v10 = vadd.f32 %v606_v0, %v602_v22 }
 0x19f   :  { %v984_v57 = vmul.f32 %v979_v52, %v573_v63  ;;  %v985_v25 = vmul.f32 %v983_v7, %v573_v63  ;;  %v996_v11 = vmul.f32 %v991_v32, %v589_v35  ;;  %v997_v3 = vmul.f32 %v995_v27, %v589_v35 }
 0x1a0   :  { %vm610_vm12 = vcmp.gt.f32.partialorder %v608_v47, 0.0  ;;  %vm611_vm13 = vcmp.gt.f32.partialorder %v609_v10, 0.0  ;;  %v612_v4 = vmul.f32 0.1, %v608_v47  ;;  %v613_v15 = vmul.f32 0.1, %v609_v10 }
 0x1a1   :  { %v986_v21 = vadd.f32 %v984_v57, %v966_v46  ;;  %v987_v30 = vadd.f32 %v985_v25, %v967_v42  ;;  %v1008_v63 = vcombine.high %v1302_v26, %v1302_v26 }
 0x1a2   :  { %v614_v12 = vsel %vm610_vm12, %v608_v47, %v612_v4  ;;  %v615_v50 = vsel %vm611_vm13, %v609_v10, %v613_v15 }
 0x1a3   :  { %v998_v24 = vadd.f32 %v996_v11, %v986_v21  ;;  %v999_v48 = vadd.f32 %v997_v3, %v987_v30  ;;  %v618_v16 = vadd.f32 %v614_v12, %v1296_v23  ;;  %v619_v6 = vadd.f32 %v616_v34, %v615_v50 }
 0x1a5   :  { %v1000_v45 = vadd.f32 %v998_v24, %v606_v0  ;;  %v1001_v54 = vadd.f32 %v999_v48, %v606_v0  ;;  %v622_v60 = vcombine.low %v618_v16, %v619_v6 }
 0x1a7   :  { %vm1002_vm14 = vcmp.gt.f32.partialorder %v1000_v45, 0.0  ;;  %vm1003_vm15 = vcmp.gt.f32.partialorder %v1001_v54, 0.0  ;;  %v1004_v61 = vmul.f32 0.1, %v1000_v45  ;;  %v1005_v55 = vmul.f32 0.1, %v1001_v54 }
 0x1a8   :  { %624 = vst [vmem:[#allocation7] sm:$0xff] %v622_v60 }
 0x1a9   :  { %v1006_v37 = vsel %vm1002_vm14, %v1000_v45, %v1004_v61  ;;  %v1007_v29 = vsel %vm1003_vm15, %v1001_v54, %v1005_v55 }
 0x1aa   :  { %v1010_v33 = vadd.f32 %v1096_v43, %v1006_v37  ;;  %v1011_v2 = vadd.f32 %v1008_v63, %v1007_v29 }
 0x1ac   :  { %v1014_v23 = vcombine.low %v1010_v33, %v1011_v2 }
 0x1ae   :  { %1017 = vst [vmem:[#allocation7 + $0x8] sm:$0xff] %v1014_v23 }
 0x1af   :  { %1152 = shalt.err (!%p1149_p6)
}
 0x1b0   :  { %s1153_s17 = scalar_lea.hbm %s1768_s6, 256 }
 0x1b1   :  { %p1154_p7 = scmp.ne.s32.totalorder %s1768_s6, %s1153_s17  ;;  %p1157_p8 = scmp.lt.u32.totalorder %s1153_s17, %s1768_s6 }
 0x1b3   :  { %p1159_p9 = pnand %p1157_p8, %p1154_p7 }
 0x1b5   :  { %1162 = shalt.err (!%p1159_p9)
}
 0x1b6   :  { %1029 = dma.vmem_to_hbm [thread:$0]  %s1024_s13, 256, %s1768_s6, [#allocation4], %s1170_s7, %s1170_s7, %s1171_s8  }
 0x1b7   :  { %1167 = dma.done.wait [#allocation4], 256  }
 0x1b8   :  { %1168 = vsyncadd [#allocation4], 4294967040 }
 0x1b9   :  { %1033 = vsyncpa [#allocation3], 1 }
 0x1ba   :  { %1034 = vsyncpa [#allocation6], 1 }
 0x1bb   :  { %1035 = vsyncpa [#allocation4], 1 }

</bundles_post_ra>
